<compile_context>
chip_gen: v6e
topology: v6e:2x2x1
jax: 0.10.0
libtpu: 0.0.40
codegen_flags: <defaults>
</compile_context>

<pallas_src>
import math
import numpy as np
import jax
import jax.numpy as jnp
from jax import lax
from jax.experimental import pallas as pl
from jax.experimental.pallas import tpu as pltpu

CPAD = 8          # channel dim padded to one full sublane tile
NEG_SLOPE = 0.2   # LeakyReLU negative slope
N_GROUPS = 3      # kd tap groups per conv
GROUP_TAPS = 9    # taps per group (kh x kw)


def _build_mask_and_offsets(D, H, W):
    """Interior mask over the lane-padded flat padded volume + flat tap offsets."""
    Dp, Hp, Wp = D + 2, H + 2, W + 2
    P = Dp * Hp * Wp
    L = ((P + 127) // 128) * 128                       # lane-padded flat length (600 -> 640)
    q = np.arange(D * H * W)
    d, r = np.divmod(q, H * W)
    h, w = np.divmod(r, W)
    p = (d + 1) * (Hp * Wp) + (h + 1) * Wp + (w + 1)   # interior positions in padded coords
    mask = np.zeros((1, L), np.float32)
    mask[0, p] = 1.0
    # flat offset of each of the 27 taps, kd-major (matches weight packing / group split)
    offsets = [(kd - 1) * Hp * Wp + (kh - 1) * Wp + (kw - 1)
               for kd in range(3) for kh in range(3) for kw in range(3)]
    return mask, offsets, L, P


def _pack_weight(w):
    """PyTorch Conv3d weight (Cout, Cin, 3,3,3) -> (3 groups, CPAD, 9*CPAD), taps kd,kh,kw."""
    co, ci = w.shape[0], w.shape[1]
    wt = jnp.transpose(w, (0, 2, 3, 4, 1)).reshape(co, 27, ci)        # [co, tap, ci]
    wt = jnp.pad(wt, ((0, CPAD - co), (0, 0), (0, CPAD - ci)))        # [CPAD, 27, CPAD]
    wt = wt.reshape(CPAD, N_GROUPS, GROUP_TAPS * CPAD)                # [CPAD, 3, 72]
    return jnp.transpose(wt, (1, 0, 2))                               # [3, CPAD, 72]


def _pack_bias(b):
    return jnp.pad(b, (0, CPAD - b.shape[0])).reshape(CPAD, 1)


def _make_resblock_kernel(offsets, L):
    def kernel(x_ref, m_ref, w1_ref, b1_ref, w2_ref, b2_ref, o_ref, r_ref):
        f32 = jnp.float32
        x = x_ref[...].astype(f32)                                    # (CPAD, L), padded coords

        def conv(inp, w_ref, b_ref):
            # im2col via XLU rolls in 3 kd-groups; each group feeds a partial accumulating
            # MXU matmul. Groups use disjoint r_ref regions -> rolls of group g+1 can
            # overlap with the matmul of group g.
            acc = None
            for g in range(N_GROUPS):
                base = g * GROUP_TAPS
                for t in range(GROUP_TAPS):
                    off = offsets[base + t]
                    shift = (-off) % L
                    rolled = inp if shift == 0 else pltpu.roll(inp, shift, axis=1)
                    row = (base + t) * CPAD
                    r_ref[row:row + CPAD, :] = rolled
                part = jnp.dot(w_ref[g],
                               r_ref[base * CPAD:(base + GROUP_TAPS) * CPAD, :],
                               preferred_element_type=f32)            # (CPAD, L)
                acc = part if acc is None else acc + part
            return acc + b_ref[...]

        h = conv(x, w1_ref, b1_ref)                                   # conv1 + bias
        h = jnp.where(h >= 0, h, NEG_SLOPE * h)                       # LeakyReLU(0.2)
        h = h * m_ref[...]                                            # re-zero halo / lane pad
        y = conv(h, w2_ref, b2_ref)                                   # conv2 + bias
        # residual add against padded x is exact at interior positions; wrapper strips halo
        o_ref[...] = (x + y).astype(o_ref.dtype)

    return kernel


@jax.jit
def resblock1_forward(x_ncdhw, w1, b1, w2, b2):
    """ResBlock_1.forward: x + conv2(leaky_relu(conv1(x))). Input/output NCDHW."""
    N, C, D, H, W = x_ncdhw.shape
    Dp, Hp, Wp = D + 2, H + 2, W + 2
    mask, offsets, L, P = _build_mask_and_offsets(D, H, W)

    # wrapper-side zero pad: channels -> CPAD sublanes, spatial halo, lane pad P -> L.
    xp = jnp.pad(x_ncdhw, ((0, 0), (0, CPAD - C), (1, 1), (1, 1), (1, 1)))
    xp = xp.reshape(N, CPAD, P)
    xp = jnp.pad(xp, ((0, 0), (0, 0), (0, L - P)))                    # (N, CPAD, L)

    out = pl.pallas_call(
        _make_resblock_kernel(offsets, L),
        out_shape=jax.ShapeDtypeStruct((N, CPAD, L), x_ncdhw.dtype),
        grid=(N,),
        in_specs=[
            pl.BlockSpec((None, CPAD, L), lambda n: (n, 0, 0)),            # x (one batch elem)
            pl.BlockSpec((1, L), lambda n: (0, 0)),                        # interior mask
            pl.BlockSpec((N_GROUPS, CPAD, GROUP_TAPS * CPAD), lambda n: (0, 0, 0)),  # w1
            pl.BlockSpec((CPAD, 1), lambda n: (0, 0)),                     # b1
            pl.BlockSpec((N_GROUPS, CPAD, GROUP_TAPS * CPAD), lambda n: (0, 0, 0)),  # w2
            pl.BlockSpec((CPAD, 1), lambda n: (0, 0)),                     # b2
        ],
        out_specs=pl.BlockSpec((None, CPAD, L), lambda n: (n, 0, 0)),
        scratch_shapes=[pltpu.VMEM((27 * CPAD, L), jnp.float32)],          # stacked rolled taps
        compiler_params=pltpu.CompilerParams(dimension_semantics=("parallel",)),
    )(xp, jnp.asarray(mask), _pack_weight(w1), _pack_bias(b1),
      _pack_weight(w2), _pack_bias(b2))

    # strip channel pad, lane pad and spatial halo on the tiny (~40 KiB) result.
    y = out[:, :C, :P].reshape(N, C, Dp, Hp, Wp)[:, :, 1:-1, 1:-1, 1:-1]
    return y


def resblock1_reference(x, w1, b1, w2, b2):
    """Pure-JAX reference (lax conv) mirroring the PyTorch forward."""
    dn = lax.conv_dimension_numbers(x.shape, w1.shape, ("NCDHW", "OIDHW", "NCDHW"))

    def conv(v, w, b):
        y = lax.conv_general_dilated(
            v, w, window_strides=(1, 1, 1), padding=[(1, 1)] * 3,
            dimension_numbers=dn)
        return y + b[None, :, None, None, None]

    h = conv(x, w1, b1)
    h = jnp.where(h >= 0, h, NEG_SLOPE * h)
    return x + conv(h, w2, b2)


if __name__ == "__main__":
    # Module config: ResBlock_1(an2=4, kernel_size=(3,3,3), i=0)
    an2 = 4
    kernel_size = (3, 3, 3)
    N, D, H, W = 2, 4, 8, 8

    # Deterministic init matching _initialize_weights (i == 0 branch).
    sigma = math.sqrt(2 / (1 * an2 * kernel_size[0] * kernel_size[1] * kernel_size[2]))
    key = jax.random.PRNGKey(0)
    kx, k1, k2 = jax.random.split(key, 3)
    x = jax.random.normal(kx, (N, an2, D, H, W), jnp.float32)       # NCDHW like PyTorch
    w1 = sigma * jax.random.normal(k1, (an2, an2) + kernel_size, jnp.float32)
    b1 = jnp.zeros((an2,), jnp.float32)
    w2 = sigma * jax.random.normal(k2, (an2, an2) + kernel_size, jnp.float32)
    b2 = jnp.zeros((an2,), jnp.float32)

    out = jax.block_until_ready(resblock1_forward(x, w1, b1, w2, b2))

    ref = resblock1_reference(x, w1, b1, w2, b2)
    assert out.shape == x.shape and out.dtype == x.dtype
    max_err = float(jnp.max(jnp.abs(out - ref)))
    if max_err > 1e-3:
        raise AssertionError(f"Pallas resblock mismatch vs reference: max_err={max_err}")

    print("KERNEL_OK")
</pallas_src>

<mosaic_0001>
module attributes {stable_mosaic.version = 11 : i64} {
  func.func @kernel(%arg0: i32, %arg1: memref<1x8x640xf32, #tpu.memory_space<vmem>>, %arg2: memref<1x640xf32, #tpu.memory_space<vmem>>, %arg3: memref<3x8x72xf32, #tpu.memory_space<vmem>>, %arg4: memref<8x1xf32, #tpu.memory_space<vmem>>, %arg5: memref<3x8x72xf32, #tpu.memory_space<vmem>>, %arg6: memref<8x1xf32, #tpu.memory_space<vmem>>, %arg7: memref<1x8x640xf32, #tpu.memory_space<vmem>>, %arg8: memref<216x640xf32, #tpu.memory_space<vmem>>) attributes {dimension_semantics = [#tpu.dimension_semantics<parallel>], iteration_bounds = array<i64: 2>, scalar_prefetch = 0 : i64, scratch_operands = 1 : i64, tpu.core_type = #tpu.core_type<tc>, window_params = [{transform_indices = @transform_0, window_bounds = array<i64: 1, 8, 640>}, {pipeline_mode = #tpu.pipeline_mode<synchronous>, transform_indices = @transform_1, window_bounds = array<i64: 1, 640>}, {pipeline_mode = #tpu.pipeline_mode<synchronous>, transform_indices = @transform_2, window_bounds = array<i64: 3, 8, 72>}, {pipeline_mode = #tpu.pipeline_mode<synchronous>, transform_indices = @transform_3, window_bounds = array<i64: 8, 1>}, {pipeline_mode = #tpu.pipeline_mode<synchronous>, transform_indices = @transform_4, window_bounds = array<i64: 3, 8, 72>}, {pipeline_mode = #tpu.pipeline_mode<synchronous>, transform_indices = @transform_5, window_bounds = array<i64: 8, 1>}, {transform_indices = @transform_6, window_bounds = array<i64: 1, 8, 640>}]} {
    %c0 = arith.constant 0 : index
    %c0_0 = arith.constant 0 : index
    %c0_1 = arith.constant 0 : index
    %0 = vector.load %arg1[%c0, %c0_0, %c0_1] : memref<1x8x640xf32, #tpu.memory_space<vmem>>, vector<1x8x640xf32>
    %1 = vector.shape_cast %0 : vector<1x8x640xf32> to vector<8x640xf32>
    %c111_i32 = arith.constant 111 : i32
    %2 = tpu.dynamic_rotate %1 by %c111_i32 dim 1 : vector<8x640xf32>, i32 -> vector<8x640xf32>
    %c0_2 = arith.constant 0 : index
    %c0_3 = arith.constant 0 : index
    %3 = vector.load %arg8[%c0_2, %c0_3] : memref<216x640xf32, #tpu.memory_space<vmem>>, vector<8x640xf32>
    tpu.vector_store %arg8[%c0_2, %c0_3], %2 {strides = array<i32>} : memref<216x640xf32, #tpu.memory_space<vmem>>, vector<8x640xf32>,
    %c110_i32 = arith.constant 110 : i32
    %4 = tpu.dynamic_rotate %1 by %c110_i32 dim 1 : vector<8x640xf32>, i32 -> vector<8x640xf32>
    %c8 = arith.constant 8 : index
    %c0_4 = arith.constant 0 : index
    %5 = vector.load %arg8[%c8, %c0_4] : memref<216x640xf32, #tpu.memory_space<vmem>>, vector<8x640xf32>
    tpu.vector_store %arg8[%c8, %c0_4], %4 {strides = array<i32>} : memref<216x640xf32, #tpu.memory_space<vmem>>, vector<8x640xf32>,
    %c109_i32 = arith.constant 109 : i32
    %6 = tpu.dynamic_rotate %1 by %c109_i32 dim 1 : vector<8x640xf32>, i32 -> vector<8x640xf32>
    %c16 = arith.constant 16 : index
    %c0_5 = arith.constant 0 : index
    %7 = vector.load %arg8[%c16, %c0_5] : memref<216x640xf32, #tpu.memory_space<vmem>>, vector<8x640xf32>
    tpu.vector_store %arg8[%c16, %c0_5], %6 {strides = array<i32>} : memref<216x640xf32, #tpu.memory_space<vmem>>, vector<8x640xf32>,
    %c101_i32 = arith.constant 101 : i32
    %8 = tpu.dynamic_rotate %1 by %c101_i32 dim 1 : vector<8x640xf32>, i32 -> vector<8x640xf32>
    %c24 = arith.constant 24 : index
    %c0_6 = arith.constant 0 : index
    %9 = vector.load %arg8[%c24, %c0_6] : memref<216x640xf32, #tpu.memory_space<vmem>>, vector<8x640xf32>
    tpu.vector_store %arg8[%c24, %c0_6], %8 {strides = array<i32>} : memref<216x640xf32, #tpu.memory_space<vmem>>, vector<8x640xf32>,
    %c100_i32 = arith.constant 100 : i32
    %10 = tpu.dynamic_rotate %1 by %c100_i32 dim 1 : vector<8x640xf32>, i32 -> vector<8x640xf32>
    %c32 = arith.constant 32 : index
    %c0_7 = arith.constant 0 : index
    %11 = vector.load %arg8[%c32, %c0_7] : memref<216x640xf32, #tpu.memory_space<vmem>>, vector<8x640xf32>
    tpu.vector_store %arg8[%c32, %c0_7], %10 {strides = array<i32>} : memref<216x640xf32, #tpu.memory_space<vmem>>, vector<8x640xf32>,
    %c99_i32 = arith.constant 99 : i32
    %12 = tpu.dynamic_rotate %1 by %c99_i32 dim 1 : vector<8x640xf32>, i32 -> vector<8x640xf32>
    %c40 = arith.constant 40 : index
    %c0_8 = arith.constant 0 : index
    %13 = vector.load %arg8[%c40, %c0_8] : memref<216x640xf32, #tpu.memory_space<vmem>>, vector<8x640xf32>
    tpu.vector_store %arg8[%c40, %c0_8], %12 {strides = array<i32>} : memref<216x640xf32, #tpu.memory_space<vmem>>, vector<8x640xf32>,
    %c91_i32 = arith.constant 91 : i32
    %14 = tpu.dynamic_rotate %1 by %c91_i32 dim 1 : vector<8x640xf32>, i32 -> vector<8x640xf32>
    %c48 = arith.constant 48 : index
    %c0_9 = arith.constant 0 : index
    %15 = vector.load %arg8[%c48, %c0_9] : memref<216x640xf32, #tpu.memory_space<vmem>>, vector<8x640xf32>
    tpu.vector_store %arg8[%c48, %c0_9], %14 {strides = array<i32>} : memref<216x640xf32, #tpu.memory_space<vmem>>, vector<8x640xf32>,
    %c90_i32 = arith.constant 90 : i32
    %16 = tpu.dynamic_rotate %1 by %c90_i32 dim 1 : vector<8x640xf32>, i32 -> vector<8x640xf32>
    %c56 = arith.constant 56 : index
    %c0_10 = arith.constant 0 : index
    %17 = vector.load %arg8[%c56, %c0_10] : memref<216x640xf32, #tpu.memory_space<vmem>>, vector<8x640xf32>
    tpu.vector_store %arg8[%c56, %c0_10], %16 {strides = array<i32>} : memref<216x640xf32, #tpu.memory_space<vmem>>, vector<8x640xf32>,
    %c89_i32 = arith.constant 89 : i32
    %18 = tpu.dynamic_rotate %1 by %c89_i32 dim 1 : vector<8x640xf32>, i32 -> vector<8x640xf32>
    %c64 = arith.constant 64 : index
    %c0_11 = arith.constant 0 : index
    %19 = vector.load %arg8[%c64, %c0_11] : memref<216x640xf32, #tpu.memory_space<vmem>>, vector<8x640xf32>
    tpu.vector_store %arg8[%c64, %c0_11], %18 {strides = array<i32>} : memref<216x640xf32, #tpu.memory_space<vmem>>, vector<8x640xf32>,
    %c0_12 = arith.constant 0 : index
    %c0_13 = arith.constant 0 : index
    %c0_14 = arith.constant 0 : index
    %20 = vector.load %arg3[%c0_12, %c0_13, %c0_14] : memref<3x8x72xf32, #tpu.memory_space<vmem>>, vector<1x8x72xf32>
    %21 = vector.shape_cast %20 : vector<1x8x72xf32> to vector<8x72xf32>
    %c0_15 = arith.constant 0 : index
    %c0_16 = arith.constant 0 : index
    %22 = vector.load %arg8[%c0_15, %c0_16] : memref<216x640xf32, #tpu.memory_space<vmem>>, vector<72x640xf32>
    %cst = arith.constant dense<0.000000e+00> : vector<8x640xf32>
    %23 = tpu.matmul %21, %22, %cst {dimension_numbers = #tpu.dot_dimension_numbers<[1], [0], [0], [1], [0, 0, 1, 1], [], []>} : vector<8x72xf32>, vector<72x640xf32>, vector<8x640xf32> -> vector<8x640xf32>
    %c11_i32 = arith.constant 11 : i32
    %24 = tpu.dynamic_rotate %1 by %c11_i32 dim 1 : vector<8x640xf32>, i32 -> vector<8x640xf32>
    %c72 = arith.constant 72 : index
    %c0_17 = arith.constant 0 : index
    %25 = vector.load %arg8[%c72, %c0_17] : memref<216x640xf32, #tpu.memory_space<vmem>>, vector<8x640xf32>
    tpu.vector_store %arg8[%c72, %c0_17], %24 {strides = array<i32>} : memref<216x640xf32, #tpu.memory_space<vmem>>, vector<8x640xf32>,
    %c10_i32 = arith.constant 10 : i32
    %26 = tpu.dynamic_rotate %1 by %c10_i32 dim 1 : vector<8x640xf32>, i32 -> vector<8x640xf32>
    %c80 = arith.constant 80 : index
    %c0_18 = arith.constant 0 : index
    %27 = vector.load %arg8[%c80, %c0_18] : memref<216x640xf32, #tpu.memory_space<vmem>>, vector<8x640xf32>
    tpu.vector_store %arg8[%c80, %c0_18], %26 {strides = array<i32>} : memref<216x640xf32, #tpu.memory_space<vmem>>, vector<8x640xf32>,
    %c9_i32 = arith.constant 9 : i32
    %28 = tpu.dynamic_rotate %1 by %c9_i32 dim 1 : vector<8x640xf32>, i32 -> vector<8x640xf32>
    %c88 = arith.constant 88 : index
    %c0_19 = arith.constant 0 : index
    %29 = vector.load %arg8[%c88, %c0_19] : memref<216x640xf32, #tpu.memory_space<vmem>>, vector<8x640xf32>
    tpu.vector_store %arg8[%c88, %c0_19], %28 {strides = array<i32>} : memref<216x640xf32, #tpu.memory_space<vmem>>, vector<8x640xf32>,
    %c1_i32 = arith.constant 1 : i32
    %30 = tpu.dynamic_rotate %1 by %c1_i32 dim 1 : vector<8x640xf32>, i32 -> vector<8x640xf32>
    %c96 = arith.constant 96 : index
    %c0_20 = arith.constant 0 : index
    %31 = vector.load %arg8[%c96, %c0_20] : memref<216x640xf32, #tpu.memory_space<vmem>>, vector<8x640xf32>
    tpu.vector_store %arg8[%c96, %c0_20], %30 {strides = array<i32>} : memref<216x640xf32, #tpu.memory_space<vmem>>, vector<8x640xf32>,
    %c104 = arith.constant 104 : index
    %c0_21 = arith.constant 0 : index
    %32 = vector.load %arg8[%c104, %c0_21] : memref<216x640xf32, #tpu.memory_space<vmem>>, vector<8x640xf32>
    tpu.vector_store %arg8[%c104, %c0_21], %1 {strides = array<i32>} : memref<216x640xf32, #tpu.memory_space<vmem>>, vector<8x640xf32>,
    %c639_i32 = arith.constant 639 : i32
    %33 = tpu.dynamic_rotate %1 by %c639_i32 dim 1 : vector<8x640xf32>, i32 -> vector<8x640xf32>
    %c112 = arith.constant 112 : index
    %c0_22 = arith.constant 0 : index
    %34 = vector.load %arg8[%c112, %c0_22] : memref<216x640xf32, #tpu.memory_space<vmem>>, vector<8x640xf32>
    tpu.vector_store %arg8[%c112, %c0_22], %33 {strides = array<i32>} : memref<216x640xf32, #tpu.memory_space<vmem>>, vector<8x640xf32>,
    %c631_i32 = arith.constant 631 : i32
    %35 = tpu.dynamic_rotate %1 by %c631_i32 dim 1 : vector<8x640xf32>, i32 -> vector<8x640xf32>
    %c120 = arith.constant 120 : index
    %c0_23 = arith.constant 0 : index
    %36 = vector.load %arg8[%c120, %c0_23] : memref<216x640xf32, #tpu.memory_space<vmem>>, vector<8x640xf32>
    tpu.vector_store %arg8[%c120, %c0_23], %35 {strides = array<i32>} : memref<216x640xf32, #tpu.memory_space<vmem>>, vector<8x640xf32>,
    %c630_i32 = arith.constant 630 : i32
    %37 = tpu.dynamic_rotate %1 by %c630_i32 dim 1 : vector<8x640xf32>, i32 -> vector<8x640xf32>
    %c128 = arith.constant 128 : index
    %c0_24 = arith.constant 0 : index
    %38 = vector.load %arg8[%c128, %c0_24] : memref<216x640xf32, #tpu.memory_space<vmem>>, vector<8x640xf32>
    tpu.vector_store %arg8[%c128, %c0_24], %37 {strides = array<i32>} : memref<216x640xf32, #tpu.memory_space<vmem>>, vector<8x640xf32>,
    %c629_i32 = arith.constant 629 : i32
    %39 = tpu.dynamic_rotate %1 by %c629_i32 dim 1 : vector<8x640xf32>, i32 -> vector<8x640xf32>
    %c136 = arith.constant 136 : index
    %c0_25 = arith.constant 0 : index
    %40 = vector.load %arg8[%c136, %c0_25] : memref<216x640xf32, #tpu.memory_space<vmem>>, vector<8x640xf32>
    tpu.vector_store %arg8[%c136, %c0_25], %39 {strides = array<i32>} : memref<216x640xf32, #tpu.memory_space<vmem>>, vector<8x640xf32>,
    %c1 = arith.constant 1 : index
    %c0_26 = arith.constant 0 : index
    %c0_27 = arith.constant 0 : index
    %41 = vector.load %arg3[%c1, %c0_26, %c0_27] : memref<3x8x72xf32, #tpu.memory_space<vmem>>, vector<1x8x72xf32>
    %42 = vector.shape_cast %41 : vector<1x8x72xf32> to vector<8x72xf32>
    %c72_28 = arith.constant 72 : index
    %c0_29 = arith.constant 0 : index
    %43 = vector.load %arg8[%c72_28, %c0_29] : memref<216x640xf32, #tpu.memory_space<vmem>>, vector<72x640xf32>
    %cst_30 = arith.constant dense<0.000000e+00> : vector<8x640xf32>
    %44 = tpu.matmul %42, %43, %cst_30 {dimension_numbers = #tpu.dot_dimension_numbers<[1], [0], [0], [1], [0, 0, 1, 1], [], []>} : vector<8x72xf32>, vector<72x640xf32>, vector<8x640xf32> -> vector<8x640xf32>
    %45 = arith.addf %23, %44 : vector<8x640xf32>
    %c551_i32 = arith.constant 551 : i32
    %46 = tpu.dynamic_rotate %1 by %c551_i32 dim 1 : vector<8x640xf32>, i32 -> vector<8x640xf32>
    %c144 = arith.constant 144 : index
    %c0_31 = arith.constant 0 : index
    %47 = vector.load %arg8[%c144, %c0_31] : memref<216x640xf32, #tpu.memory_space<vmem>>, vector<8x640xf32>
    tpu.vector_store %arg8[%c144, %c0_31], %46 {strides = array<i32>} : memref<216x640xf32, #tpu.memory_space<vmem>>, vector<8x640xf32>,
    %c550_i32 = arith.constant 550 : i32
    %48 = tpu.dynamic_rotate %1 by %c550_i32 dim 1 : vector<8x640xf32>, i32 -> vector<8x640xf32>
    %c152 = arith.constant 152 : index
    %c0_32 = arith.constant 0 : index
    %49 = vector.load %arg8[%c152, %c0_32] : memref<216x640xf32, #tpu.memory_space<vmem>>, vector<8x640xf32>
    tpu.vector_store %arg8[%c152, %c0_32], %48 {strides = array<i32>} : memref<216x640xf32, #tpu.memory_space<vmem>>, vector<8x640xf32>,
    %c549_i32 = arith.constant 549 : i32
    %50 = tpu.dynamic_rotate %1 by %c549_i32 dim 1 : vector<8x640xf32>, i32 -> vector<8x640xf32>
    %c160 = arith.constant 160 : index
    %c0_33 = arith.constant 0 : index
    %51 = vector.load %arg8[%c160, %c0_33] : memref<216x640xf32, #tpu.memory_space<vmem>>, vector<8x640xf32>
    tpu.vector_store %arg8[%c160, %c0_33], %50 {strides = array<i32>} : memref<216x640xf32, #tpu.memory_space<vmem>>, vector<8x640xf32>,
    %c541_i32 = arith.constant 541 : i32
    %52 = tpu.dynamic_rotate %1 by %c541_i32 dim 1 : vector<8x640xf32>, i32 -> vector<8x640xf32>
    %c168 = arith.constant 168 : index
    %c0_34 = arith.constant 0 : index
    %53 = vector.load %arg8[%c168, %c0_34] : memref<216x640xf32, #tpu.memory_space<vmem>>, vector<8x640xf32>
    tpu.vector_store %arg8[%c168, %c0_34], %52 {strides = array<i32>} : memref<216x640xf32, #tpu.memory_space<vmem>>, vector<8x640xf32>,
    %c540_i32 = arith.constant 540 : i32
    %54 = tpu.dynamic_rotate %1 by %c540_i32 dim 1 : vector<8x640xf32>, i32 -> vector<8x640xf32>
    %c176 = arith.constant 176 : index
    %c0_35 = arith.constant 0 : index
    %55 = vector.load %arg8[%c176, %c0_35] : memref<216x640xf32, #tpu.memory_space<vmem>>, vector<8x640xf32>
    tpu.vector_store %arg8[%c176, %c0_35], %54 {strides = array<i32>} : memref<216x640xf32, #tpu.memory_space<vmem>>, vector<8x640xf32>,
    %c539_i32 = arith.constant 539 : i32
    %56 = tpu.dynamic_rotate %1 by %c539_i32 dim 1 : vector<8x640xf32>, i32 -> vector<8x640xf32>
    %c184 = arith.constant 184 : index
    %c0_36 = arith.constant 0 : index
    %57 = vector.load %arg8[%c184, %c0_36] : memref<216x640xf32, #tpu.memory_space<vmem>>, vector<8x640xf32>
    tpu.vector_store %arg8[%c184, %c0_36], %56 {strides = array<i32>} : memref<216x640xf32, #tpu.memory_space<vmem>>, vector<8x640xf32>,
    %c531_i32 = arith.constant 531 : i32
    %58 = tpu.dynamic_rotate %1 by %c531_i32 dim 1 : vector<8x640xf32>, i32 -> vector<8x640xf32>
    %c192 = arith.constant 192 : index
    %c0_37 = arith.constant 0 : index
    %59 = vector.load %arg8[%c192, %c0_37] : memref<216x640xf32, #tpu.memory_space<vmem>>, vector<8x640xf32>
    tpu.vector_store %arg8[%c192, %c0_37], %58 {strides = array<i32>} : memref<216x640xf32, #tpu.memory_space<vmem>>, vector<8x640xf32>,
    %c530_i32 = arith.constant 530 : i32
    %60 = tpu.dynamic_rotate %1 by %c530_i32 dim 1 : vector<8x640xf32>, i32 -> vector<8x640xf32>
    %c200 = arith.constant 200 : index
    %c0_38 = arith.constant 0 : index
    %61 = vector.load %arg8[%c200, %c0_38] : memref<216x640xf32, #tpu.memory_space<vmem>>, vector<8x640xf32>
    tpu.vector_store %arg8[%c200, %c0_38], %60 {strides = array<i32>} : memref<216x640xf32, #tpu.memory_space<vmem>>, vector<8x640xf32>,
    %c529_i32 = arith.constant 529 : i32
    %62 = tpu.dynamic_rotate %1 by %c529_i32 dim 1 : vector<8x640xf32>, i32 -> vector<8x640xf32>
    %c208 = arith.constant 208 : index
    %c0_39 = arith.constant 0 : index
    %63 = vector.load %arg8[%c208, %c0_39] : memref<216x640xf32, #tpu.memory_space<vmem>>, vector<8x640xf32>
    tpu.vector_store %arg8[%c208, %c0_39], %62 {strides = array<i32>} : memref<216x640xf32, #tpu.memory_space<vmem>>, vector<8x640xf32>,
    %c2 = arith.constant 2 : index
    %c0_40 = arith.constant 0 : index
    %c0_41 = arith.constant 0 : index
    %64 = vector.load %arg3[%c2, %c0_40, %c0_41] : memref<3x8x72xf32, #tpu.memory_space<vmem>>, vector<1x8x72xf32>
    %65 = vector.shape_cast %64 : vector<1x8x72xf32> to vector<8x72xf32>
    %c144_42 = arith.constant 144 : index
    %c0_43 = arith.constant 0 : index
    %66 = vector.load %arg8[%c144_42, %c0_43] : memref<216x640xf32, #tpu.memory_space<vmem>>, vector<72x640xf32>
    %cst_44 = arith.constant dense<0.000000e+00> : vector<8x640xf32>
    %67 = tpu.matmul %65, %66, %cst_44 {dimension_numbers = #tpu.dot_dimension_numbers<[1], [0], [0], [1], [0, 0, 1, 1], [], []>} : vector<8x72xf32>, vector<72x640xf32>, vector<8x640xf32> -> vector<8x640xf32>
    %68 = arith.addf %45, %67 : vector<8x640xf32>
    %c0_45 = arith.constant 0 : index
    %c0_46 = arith.constant 0 : index
    %69 = vector.load %arg4[%c0_45, %c0_46] : memref<8x1xf32, #tpu.memory_space<vmem>>, vector<8x1xf32>
    %70 = vector.broadcast %69 : vector<8x1xf32> to vector<8x640xf32>
    %71 = arith.addf %68, %70 : vector<8x640xf32>
    %cst_47 = arith.constant 0.000000e+00 : f32
    %72 = vector.broadcast %cst_47 : f32 to vector<8x640xf32>
    %73 = arith.cmpf oge, %71, %72 : vector<8x640xf32>
    %cst_48 = arith.constant 2.000000e-01 : f32
    %74 = vector.broadcast %cst_48 : f32 to vector<8x640xf32>
    %75 = arith.mulf %74, %71 : vector<8x640xf32>
    %76 = arith.select %73, %71, %75 : vector<8x640xi1>, vector<8x640xf32>
    %c0_49 = arith.constant 0 : index
    %c0_50 = arith.constant 0 : index
    %77 = vector.load %arg2[%c0_49, %c0_50] : memref<1x640xf32, #tpu.memory_space<vmem>>, vector<1x640xf32>
    %78 = vector.broadcast %77 : vector<1x640xf32> to vector<8x640xf32>
    %79 = arith.mulf %76, %78 : vector<8x640xf32>
    %c111_i32_51 = arith.constant 111 : i32
    %80 = tpu.dynamic_rotate %79 by %c111_i32_51 dim 1 : vector<8x640xf32>, i32 -> vector<8x640xf32>
    %c0_52 = arith.constant 0 : index
    %c0_53 = arith.constant 0 : index
    %81 = vector.load %arg8[%c0_52, %c0_53] : memref<216x640xf32, #tpu.memory_space<vmem>>, vector<8x640xf32>
    tpu.vector_store %arg8[%c0_52, %c0_53], %80 {strides = array<i32>} : memref<216x640xf32, #tpu.memory_space<vmem>>, vector<8x640xf32>,
    %c110_i32_54 = arith.constant 110 : i32
    %82 = tpu.dynamic_rotate %79 by %c110_i32_54 dim 1 : vector<8x640xf32>, i32 -> vector<8x640xf32>
    %c8_55 = arith.constant 8 : index
    %c0_56 = arith.constant 0 : index
    %83 = vector.load %arg8[%c8_55, %c0_56] : memref<216x640xf32, #tpu.memory_space<vmem>>, vector<8x640xf32>
    tpu.vector_store %arg8[%c8_55, %c0_56], %82 {strides = array<i32>} : memref<216x640xf32, #tpu.memory_space<vmem>>, vector<8x640xf32>,
    %c109_i32_57 = arith.constant 109 : i32
    %84 = tpu.dynamic_rotate %79 by %c109_i32_57 dim 1 : vector<8x640xf32>, i32 -> vector<8x640xf32>
    %c16_58 = arith.constant 16 : index
    %c0_59 = arith.constant 0 : index
    %85 = vector.load %arg8[%c16_58, %c0_59] : memref<216x640xf32, #tpu.memory_space<vmem>>, vector<8x640xf32>
    tpu.vector_store %arg8[%c16_58, %c0_59], %84 {strides = array<i32>} : memref<216x640xf32, #tpu.memory_space<vmem>>, vector<8x640xf32>,
    %c101_i32_60 = arith.constant 101 : i32
    %86 = tpu.dynamic_rotate %79 by %c101_i32_60 dim 1 : vector<8x640xf32>, i32 -> vector<8x640xf32>
    %c24_61 = arith.constant 24 : index
    %c0_62 = arith.constant 0 : index
    %87 = vector.load %arg8[%c24_61, %c0_62] : memref<216x640xf32, #tpu.memory_space<vmem>>, vector<8x640xf32>
    tpu.vector_store %arg8[%c24_61, %c0_62], %86 {strides = array<i32>} : memref<216x640xf32, #tpu.memory_space<vmem>>, vector<8x640xf32>,
    %c100_i32_63 = arith.constant 100 : i32
    %88 = tpu.dynamic_rotate %79 by %c100_i32_63 dim 1 : vector<8x640xf32>, i32 -> vector<8x640xf32>
    %c32_64 = arith.constant 32 : index
    %c0_65 = arith.constant 0 : index
    %89 = vector.load %arg8[%c32_64, %c0_65] : memref<216x640xf32, #tpu.memory_space<vmem>>, vector<8x640xf32>
    tpu.vector_store %arg8[%c32_64, %c0_65], %88 {strides = array<i32>} : memref<216x640xf32, #tpu.memory_space<vmem>>, vector<8x640xf32>,
    %c99_i32_66 = arith.constant 99 : i32
    %90 = tpu.dynamic_rotate %79 by %c99_i32_66 dim 1 : vector<8x640xf32>, i32 -> vector<8x640xf32>
    %c40_67 = arith.constant 40 : index
    %c0_68 = arith.constant 0 : index
    %91 = vector.load %arg8[%c40_67, %c0_68] : memref<216x640xf32, #tpu.memory_space<vmem>>, vector<8x640xf32>
    tpu.vector_store %arg8[%c40_67, %c0_68], %90 {strides = array<i32>} : memref<216x640xf32, #tpu.memory_space<vmem>>, vector<8x640xf32>,
    %c91_i32_69 = arith.constant 91 : i32
    %92 = tpu.dynamic_rotate %79 by %c91_i32_69 dim 1 : vector<8x640xf32>, i32 -> vector<8x640xf32>
    %c48_70 = arith.constant 48 : index
    %c0_71 = arith.constant 0 : index
    %93 = vector.load %arg8[%c48_70, %c0_71] : memref<216x640xf32, #tpu.memory_space<vmem>>, vector<8x640xf32>
    tpu.vector_store %arg8[%c48_70, %c0_71], %92 {strides = array<i32>} : memref<216x640xf32, #tpu.memory_space<vmem>>, vector<8x640xf32>,
    %c90_i32_72 = arith.constant 90 : i32
    %94 = tpu.dynamic_rotate %79 by %c90_i32_72 dim 1 : vector<8x640xf32>, i32 -> vector<8x640xf32>
    %c56_73 = arith.constant 56 : index
    %c0_74 = arith.constant 0 : index
    %95 = vector.load %arg8[%c56_73, %c0_74] : memref<216x640xf32, #tpu.memory_space<vmem>>, vector<8x640xf32>
    tpu.vector_store %arg8[%c56_73, %c0_74], %94 {strides = array<i32>} : memref<216x640xf32, #tpu.memory_space<vmem>>, vector<8x640xf32>,
    %c89_i32_75 = arith.constant 89 : i32
    %96 = tpu.dynamic_rotate %79 by %c89_i32_75 dim 1 : vector<8x640xf32>, i32 -> vector<8x640xf32>
    %c64_76 = arith.constant 64 : index
    %c0_77 = arith.constant 0 : index
    %97 = vector.load %arg8[%c64_76, %c0_77] : memref<216x640xf32, #tpu.memory_space<vmem>>, vector<8x640xf32>
    tpu.vector_store %arg8[%c64_76, %c0_77], %96 {strides = array<i32>} : memref<216x640xf32, #tpu.memory_space<vmem>>, vector<8x640xf32>,
    %c0_78 = arith.constant 0 : index
    %c0_79 = arith.constant 0 : index
    %c0_80 = arith.constant 0 : index
    %98 = vector.load %arg5[%c0_78, %c0_79, %c0_80] : memref<3x8x72xf32, #tpu.memory_space<vmem>>, vector<1x8x72xf32>
    %99 = vector.shape_cast %98 : vector<1x8x72xf32> to vector<8x72xf32>
    %c0_81 = arith.constant 0 : index
    %c0_82 = arith.constant 0 : index
    %100 = vector.load %arg8[%c0_81, %c0_82] : memref<216x640xf32, #tpu.memory_space<vmem>>, vector<72x640xf32>
    %cst_83 = arith.constant dense<0.000000e+00> : vector<8x640xf32>
    %101 = tpu.matmul %99, %100, %cst_83 {dimension_numbers = #tpu.dot_dimension_numbers<[1], [0], [0], [1], [0, 0, 1, 1], [], []>} : vector<8x72xf32>, vector<72x640xf32>, vector<8x640xf32> -> vector<8x640xf32>
    %c11_i32_84 = arith.constant 11 : i32
    %102 = tpu.dynamic_rotate %79 by %c11_i32_84 dim 1 : vector<8x640xf32>, i32 -> vector<8x640xf32>
    %c72_85 = arith.constant 72 : index
    %c0_86 = arith.constant 0 : index
    %103 = vector.load %arg8[%c72_85, %c0_86] : memref<216x640xf32, #tpu.memory_space<vmem>>, vector<8x640xf32>
    tpu.vector_store %arg8[%c72_85, %c0_86], %102 {strides = array<i32>} : memref<216x640xf32, #tpu.memory_space<vmem>>, vector<8x640xf32>,
    %c10_i32_87 = arith.constant 10 : i32
    %104 = tpu.dynamic_rotate %79 by %c10_i32_87 dim 1 : vector<8x640xf32>, i32 -> vector<8x640xf32>
    %c80_88 = arith.constant 80 : index
    %c0_89 = arith.constant 0 : index
    %105 = vector.load %arg8[%c80_88, %c0_89] : memref<216x640xf32, #tpu.memory_space<vmem>>, vector<8x640xf32>
    tpu.vector_store %arg8[%c80_88, %c0_89], %104 {strides = array<i32>} : memref<216x640xf32, #tpu.memory_space<vmem>>, vector<8x640xf32>,
    %c9_i32_90 = arith.constant 9 : i32
    %106 = tpu.dynamic_rotate %79 by %c9_i32_90 dim 1 : vector<8x640xf32>, i32 -> vector<8x640xf32>
    %c88_91 = arith.constant 88 : index
    %c0_92 = arith.constant 0 : index
    %107 = vector.load %arg8[%c88_91, %c0_92] : memref<216x640xf32, #tpu.memory_space<vmem>>, vector<8x640xf32>
    tpu.vector_store %arg8[%c88_91, %c0_92], %106 {strides = array<i32>} : memref<216x640xf32, #tpu.memory_space<vmem>>, vector<8x640xf32>,
    %c1_i32_93 = arith.constant 1 : i32
    %108 = tpu.dynamic_rotate %79 by %c1_i32_93 dim 1 : vector<8x640xf32>, i32 -> vector<8x640xf32>
    %c96_94 = arith.constant 96 : index
    %c0_95 = arith.constant 0 : index
    %109 = vector.load %arg8[%c96_94, %c0_95] : memref<216x640xf32, #tpu.memory_space<vmem>>, vector<8x640xf32>
    tpu.vector_store %arg8[%c96_94, %c0_95], %108 {strides = array<i32>} : memref<216x640xf32, #tpu.memory_space<vmem>>, vector<8x640xf32>,
    %c104_96 = arith.constant 104 : index
    %c0_97 = arith.constant 0 : index
    %110 = vector.load %arg8[%c104_96, %c0_97] : memref<216x640xf32, #tpu.memory_space<vmem>>, vector<8x640xf32>
    tpu.vector_store %arg8[%c104_96, %c0_97], %79 {strides = array<i32>} : memref<216x640xf32, #tpu.memory_space<vmem>>, vector<8x640xf32>,
    %c639_i32_98 = arith.constant 639 : i32
    %111 = tpu.dynamic_rotate %79 by %c639_i32_98 dim 1 : vector<8x640xf32>, i32 -> vector<8x640xf32>
    %c112_99 = arith.constant 112 : index
    %c0_100 = arith.constant 0 : index
    %112 = vector.load %arg8[%c112_99, %c0_100] : memref<216x640xf32, #tpu.memory_space<vmem>>, vector<8x640xf32>
    tpu.vector_store %arg8[%c112_99, %c0_100], %111 {strides = array<i32>} : memref<216x640xf32, #tpu.memory_space<vmem>>, vector<8x640xf32>,
    %c631_i32_101 = arith.constant 631 : i32
    %113 = tpu.dynamic_rotate %79 by %c631_i32_101 dim 1 : vector<8x640xf32>, i32 -> vector<8x640xf32>
    %c120_102 = arith.constant 120 : index
    %c0_103 = arith.constant 0 : index
    %114 = vector.load %arg8[%c120_102, %c0_103] : memref<216x640xf32, #tpu.memory_space<vmem>>, vector<8x640xf32>
    tpu.vector_store %arg8[%c120_102, %c0_103], %113 {strides = array<i32>} : memref<216x640xf32, #tpu.memory_space<vmem>>, vector<8x640xf32>,
    %c630_i32_104 = arith.constant 630 : i32
    %115 = tpu.dynamic_rotate %79 by %c630_i32_104 dim 1 : vector<8x640xf32>, i32 -> vector<8x640xf32>
    %c128_105 = arith.constant 128 : index
    %c0_106 = arith.constant 0 : index
    %116 = vector.load %arg8[%c128_105, %c0_106] : memref<216x640xf32, #tpu.memory_space<vmem>>, vector<8x640xf32>
    tpu.vector_store %arg8[%c128_105, %c0_106], %115 {strides = array<i32>} : memref<216x640xf32, #tpu.memory_space<vmem>>, vector<8x640xf32>,
    %c629_i32_107 = arith.constant 629 : i32
    %117 = tpu.dynamic_rotate %79 by %c629_i32_107 dim 1 : vector<8x640xf32>, i32 -> vector<8x640xf32>
    %c136_108 = arith.constant 136 : index
    %c0_109 = arith.constant 0 : index
    %118 = vector.load %arg8[%c136_108, %c0_109] : memref<216x640xf32, #tpu.memory_space<vmem>>, vector<8x640xf32>
    tpu.vector_store %arg8[%c136_108, %c0_109], %117 {strides = array<i32>} : memref<216x640xf32, #tpu.memory_space<vmem>>, vector<8x640xf32>,
    %c1_110 = arith.constant 1 : index
    %c0_111 = arith.constant 0 : index
    %c0_112 = arith.constant 0 : index
    %119 = vector.load %arg5[%c1_110, %c0_111, %c0_112] : memref<3x8x72xf32, #tpu.memory_space<vmem>>, vector<1x8x72xf32>
    %120 = vector.shape_cast %119 : vector<1x8x72xf32> to vector<8x72xf32>
    %c72_113 = arith.constant 72 : index
    %c0_114 = arith.constant 0 : index
    %121 = vector.load %arg8[%c72_113, %c0_114] : memref<216x640xf32, #tpu.memory_space<vmem>>, vector<72x640xf32>
    %cst_115 = arith.constant dense<0.000000e+00> : vector<8x640xf32>
    %122 = tpu.matmul %120, %121, %cst_115 {dimension_numbers = #tpu.dot_dimension_numbers<[1], [0], [0], [1], [0, 0, 1, 1], [], []>} : vector<8x72xf32>, vector<72x640xf32>, vector<8x640xf32> -> vector<8x640xf32>
    %123 = arith.addf %101, %122 : vector<8x640xf32>
    %c551_i32_116 = arith.constant 551 : i32
    %124 = tpu.dynamic_rotate %79 by %c551_i32_116 dim 1 : vector<8x640xf32>, i32 -> vector<8x640xf32>
    %c144_117 = arith.constant 144 : index
    %c0_118 = arith.constant 0 : index
    %125 = vector.load %arg8[%c144_117, %c0_118] : memref<216x640xf32, #tpu.memory_space<vmem>>, vector<8x640xf32>
    tpu.vector_store %arg8[%c144_117, %c0_118], %124 {strides = array<i32>} : memref<216x640xf32, #tpu.memory_space<vmem>>, vector<8x640xf32>,
    %c550_i32_119 = arith.constant 550 : i32
    %126 = tpu.dynamic_rotate %79 by %c550_i32_119 dim 1 : vector<8x640xf32>, i32 -> vector<8x640xf32>
    %c152_120 = arith.constant 152 : index
    %c0_121 = arith.constant 0 : index
    %127 = vector.load %arg8[%c152_120, %c0_121] : memref<216x640xf32, #tpu.memory_space<vmem>>, vector<8x640xf32>
    tpu.vector_store %arg8[%c152_120, %c0_121], %126 {strides = array<i32>} : memref<216x640xf32, #tpu.memory_space<vmem>>, vector<8x640xf32>,
    %c549_i32_122 = arith.constant 549 : i32
    %128 = tpu.dynamic_rotate %79 by %c549_i32_122 dim 1 : vector<8x640xf32>, i32 -> vector<8x640xf32>
    %c160_123 = arith.constant 160 : index
    %c0_124 = arith.constant 0 : index
    %129 = vector.load %arg8[%c160_123, %c0_124] : memref<216x640xf32, #tpu.memory_space<vmem>>, vector<8x640xf32>
    tpu.vector_store %arg8[%c160_123, %c0_124], %128 {strides = array<i32>} : memref<216x640xf32, #tpu.memory_space<vmem>>, vector<8x640xf32>,
    %c541_i32_125 = arith.constant 541 : i32
    %130 = tpu.dynamic_rotate %79 by %c541_i32_125 dim 1 : vector<8x640xf32>, i32 -> vector<8x640xf32>
    %c168_126 = arith.constant 168 : index
    %c0_127 = arith.constant 0 : index
    %131 = vector.load %arg8[%c168_126, %c0_127] : memref<216x640xf32, #tpu.memory_space<vmem>>, vector<8x640xf32>
    tpu.vector_store %arg8[%c168_126, %c0_127], %130 {strides = array<i32>} : memref<216x640xf32, #tpu.memory_space<vmem>>, vector<8x640xf32>,
    %c540_i32_128 = arith.constant 540 : i32
    %132 = tpu.dynamic_rotate %79 by %c540_i32_128 dim 1 : vector<8x640xf32>, i32 -> vector<8x640xf32>
    %c176_129 = arith.constant 176 : index
    %c0_130 = arith.constant 0 : index
    %133 = vector.load %arg8[%c176_129, %c0_130] : memref<216x640xf32, #tpu.memory_space<vmem>>, vector<8x640xf32>
    tpu.vector_store %arg8[%c176_129, %c0_130], %132 {strides = array<i32>} : memref<216x640xf32, #tpu.memory_space<vmem>>, vector<8x640xf32>,
    %c539_i32_131 = arith.constant 539 : i32
    %134 = tpu.dynamic_rotate %79 by %c539_i32_131 dim 1 : vector<8x640xf32>, i32 -> vector<8x640xf32>
    %c184_132 = arith.constant 184 : index
    %c0_133 = arith.constant 0 : index
    %135 = vector.load %arg8[%c184_132, %c0_133] : memref<216x640xf32, #tpu.memory_space<vmem>>, vector<8x640xf32>
    tpu.vector_store %arg8[%c184_132, %c0_133], %134 {strides = array<i32>} : memref<216x640xf32, #tpu.memory_space<vmem>>, vector<8x640xf32>,
    %c531_i32_134 = arith.constant 531 : i32
    %136 = tpu.dynamic_rotate %79 by %c531_i32_134 dim 1 : vector<8x640xf32>, i32 -> vector<8x640xf32>
    %c192_135 = arith.constant 192 : index
    %c0_136 = arith.constant 0 : index
    %137 = vector.load %arg8[%c192_135, %c0_136] : memref<216x640xf32, #tpu.memory_space<vmem>>, vector<8x640xf32>
    tpu.vector_store %arg8[%c192_135, %c0_136], %136 {strides = array<i32>} : memref<216x640xf32, #tpu.memory_space<vmem>>, vector<8x640xf32>,
    %c530_i32_137 = arith.constant 530 : i32
    %138 = tpu.dynamic_rotate %79 by %c530_i32_137 dim 1 : vector<8x640xf32>, i32 -> vector<8x640xf32>
    %c200_138 = arith.constant 200 : index
    %c0_139 = arith.constant 0 : index
    %139 = vector.load %arg8[%c200_138, %c0_139] : memref<216x640xf32, #tpu.memory_space<vmem>>, vector<8x640xf32>
    tpu.vector_store %arg8[%c200_138, %c0_139], %138 {strides = array<i32>} : memref<216x640xf32, #tpu.memory_space<vmem>>, vector<8x640xf32>,
    %c529_i32_140 = arith.constant 529 : i32
    %140 = tpu.dynamic_rotate %79 by %c529_i32_140 dim 1 : vector<8x640xf32>, i32 -> vector<8x640xf32>
    %c208_141 = arith.constant 208 : index
    %c0_142 = arith.constant 0 : index
    %141 = vector.load %arg8[%c208_141, %c0_142] : memref<216x640xf32, #tpu.memory_space<vmem>>, vector<8x640xf32>
    tpu.vector_store %arg8[%c208_141, %c0_142], %140 {strides = array<i32>} : memref<216x640xf32, #tpu.memory_space<vmem>>, vector<8x640xf32>,
    %c2_143 = arith.constant 2 : index
    %c0_144 = arith.constant 0 : index
    %c0_145 = arith.constant 0 : index
    %142 = vector.load %arg5[%c2_143, %c0_144, %c0_145] : memref<3x8x72xf32, #tpu.memory_space<vmem>>, vector<1x8x72xf32>
    %143 = vector.shape_cast %142 : vector<1x8x72xf32> to vector<8x72xf32>
    %c144_146 = arith.constant 144 : index
    %c0_147 = arith.constant 0 : index
    %144 = vector.load %arg8[%c144_146, %c0_147] : memref<216x640xf32, #tpu.memory_space<vmem>>, vector<72x640xf32>
    %cst_148 = arith.constant dense<0.000000e+00> : vector<8x640xf32>
    %145 = tpu.matmul %143, %144, %cst_148 {dimension_numbers = #tpu.dot_dimension_numbers<[1], [0], [0], [1], [0, 0, 1, 1], [], []>} : vector<8x72xf32>, vector<72x640xf32>, vector<8x640xf32> -> vector<8x640xf32>
    %146 = arith.addf %123, %145 : vector<8x640xf32>
    %c0_149 = arith.constant 0 : index
    %c0_150 = arith.constant 0 : index
    %147 = vector.load %arg6[%c0_149, %c0_150] : memref<8x1xf32, #tpu.memory_space<vmem>>, vector<8x1xf32>
    %148 = vector.broadcast %147 : vector<8x1xf32> to vector<8x640xf32>
    %149 = arith.addf %146, %148 : vector<8x640xf32>
    %150 = arith.addf %1, %149 : vector<8x640xf32>
    %c0_151 = arith.constant 0 : index
    %c0_152 = arith.constant 0 : index
    %c0_153 = arith.constant 0 : index
    %151 = vector.load %arg7[%c0_151, %c0_152, %c0_153] : memref<1x8x640xf32, #tpu.memory_space<vmem>>, vector<1x8x640xf32>
    %152 = vector.shape_cast %151 : vector<1x8x640xf32> to vector<8x640xf32>
    %153 = vector.shape_cast %150 : vector<8x640xf32> to vector<1x8x640xf32>
    tpu.vector_store %arg7[%c0_151, %c0_152, %c0_153], %153 {strides = array<i32>} : memref<1x8x640xf32, #tpu.memory_space<vmem>>, vector<1x8x640xf32>,
    return
  }
  func.func @transform_0(%arg0: i32) -> (i32, i32, i32) {
    %c0_i32 = arith.constant 0 : i32
    %c0_i32_0 = arith.constant 0 : i32
    %c0_i32_1 = arith.constant 0 : i32
    return %arg0, %c0_i32, %c0_i32_0 : i32, i32, i32
  }
  func.func @transform_1(%arg0: i32) -> (i32, i32) {
    %c0_i32 = arith.constant 0 : i32
    %c0_i32_0 = arith.constant 0 : i32
    %c0_i32_1 = arith.constant 0 : i32
    return %c0_i32, %c0_i32_0 : i32, i32
  }
  func.func @transform_2(%arg0: i32) -> (i32, i32, i32) {
    %c0_i32 = arith.constant 0 : i32
    %c0_i32_0 = arith.constant 0 : i32
    %c0_i32_1 = arith.constant 0 : i32
    %c0_i32_2 = arith.constant 0 : i32
    return %c0_i32, %c0_i32_0, %c0_i32_1 : i32, i32, i32
  }
  func.func @transform_3(%arg0: i32) -> (i32, i32) {
    %c0_i32 = arith.constant 0 : i32
    %c0_i32_0 = arith.constant 0 : i32
    %c0_i32_1 = arith.constant 0 : i32
    return %c0_i32, %c0_i32_0 : i32, i32
  }
  func.func @transform_4(%arg0: i32) -> (i32, i32, i32) {
    %c0_i32 = arith.constant 0 : i32
    %c0_i32_0 = arith.constant 0 : i32
    %c0_i32_1 = arith.constant 0 : i32
    %c0_i32_2 = arith.constant 0 : i32
    return %c0_i32, %c0_i32_0, %c0_i32_1 : i32, i32, i32
  }
  func.func @transform_5(%arg0: i32) -> (i32, i32) {
    %c0_i32 = arith.constant 0 : i32
    %c0_i32_0 = arith.constant 0 : i32
    %c0_i32_1 = arith.constant 0 : i32
    return %c0_i32, %c0_i32_0 : i32, i32
  }
  func.func @transform_6(%arg0: i32) -> (i32, i32, i32) {
    %c0_i32 = arith.constant 0 : i32
    %c0_i32_0 = arith.constant 0 : i32
    %c0_i32_1 = arith.constant 0 : i32
    return %arg0, %c0_i32, %c0_i32_0 : i32, i32, i32
  }
}

</mosaic_0001>

<bundles_post_ra>
// kernel: resblock1_forward.1
= control target key start
LH: loop header
LB: loop body
LE: loop exit
PB: predicated region body
PF: predicated region fallthrough
CT: control target
= control target key end

     0   :  { %s3383_s21 = smov 0   ;;  %s5214_s0 = inlined_call_operand.vmem [shape: f32[2,8,640], index: 0, kind: input, shape index: {}]   ;;  %s5215_s1 = inlined_call_operand.vmem [shape: f32[1,640], index: 1, kind: input, shape index: {}]   ;;  %s5216_s2 = inlined_call_operand.vmem [shape: f32[3,8,72], index: 2, kind: input, shape index: {}]   ;;  %s5217_s3 = inlined_call_operand.vmem [shape: f32[8,1], index: 3, kind: input, shape index: {}]   ;;  %s5218_s4 = inlined_call_operand.vmem [shape: f32[3,8,72], index: 4, kind: input, shape index: {}]   ;;  %s5219_s5 = inlined_call_operand.vmem [shape: f32[8,1], index: 5, kind: input, shape index: {}]   ;;  %s5220_s6 = inlined_call_operand.vmem [shape: f32[2,8,640], index: 6, kind: output, shape index: {}]  }
   0x1 LB: > { %s3050_s22 = sadd.s32 4294967295, %s3317_s21   ;;  %p3054_p0 = scmp.ge.s32.totalorder %s3317_s21, 1  ;;  %s3317_s21 = sphi %s3383_s21, %s16_s21  }
   0x2   : > { %p212_p1 = scmp.lt.s32.totalorder %s3317_s21, 3 }
   0x4   : > { %p213_p2 = pnand %p3054_p0, %p212_p1 }
   0x6   : > { %216 = sbr.rel (%p213_p2) target bundleno = 1176 (0x498), region = 44 }
   0xb   : > { %p242_p3 = scmp.lt.s32.totalorder %s3050_s22, 1  ;;  %s3319_s27 = smov 117   ;;  %v5255_v5 = vmov 0.0   ;;  %v267_v6 = vlaneseq  ;;  %vm714_vm8 = vcmask 588800   ;;  %vm3339_vm9 = vmmov 0  }
   0xc   : > { %s3320_s28 = smov 118   ;;  %s3321_s29 = smov 119   ;;  %782 = vmatprep.mubr.f32.mxu0 %v5255_v5  ;;  %853 = vmatprep.mubr.f32.mxu1 %v5255_v5 }
   0xd   : > { %s5360_s22 = smov (!%p242_p3, %s3050_s22), 1  ;;  %s3322_s30 = smov 127   ;;  %v3535_v7 = vand.u32 127, %v267_v6 }
   0xe   : > { %s5221_s23 = smul.u32 40, %s5360_s22  ;;  %s3323_s7 = smov 1  }
   0xf   : > { %s3324_s8 = smov 9   ;;  %s3326_s9 = smov 10   ;;  %vm656_vm0 = vcmp.lt.s32.totalorder %v3535_v7, 117  ;;  %vm635_vm1 = vcmp.lt.s32.totalorder %v3535_v7, 118  ;;  %vm614_vm2 = vcmp.lt.s32.totalorder %v3535_v7, 119  ;;  %vm593_vm3 = vcmp.lt.s32.totalorder %v3535_v7, 127 }
  0x10   : > { %s3399_s26 = scalar_lea.vmem %s5214_s0, %s5221_s23  ;;  %s3327_s10 = smov 11   ;;  %vm567_vm4 = vcmp.lt.s32.totalorder %v3535_v7, 1  ;;  %vm5234_vm5 = vcmp.lt.s32.totalorder %v3535_v7, 9  ;;  %vm5233_vm6 = vcmp.lt.s32.totalorder %v3535_v7, 10  ;;  %vm5230_vm7 = vcmp.lt.s32.totalorder %v3535_v7, 11 }
  0x11   : > { %v3402_v0 = vld [vmem:[%s3399_s26 + $0x8] sm:$0xff]  ;;  %v3405_v1 = vld [vmem:[%s3399_s26] sm:$0xff]  ;;  %v3412_v2 = vld [vmem:[%s3399_s26 + $0x10] sm:$0xff]  ;;  %s3328_s11 = smov 89   ;;  %s3329_s12 = smov 90   ;;  %vm5251_vm10 = vcmp.lt.s32.totalorder %v3535_v7, 89 }
  0x12   : > { %648 = vrot.lane.b32.xlu0 %v3402_v0, %s3319_s27  ;;  %646 = vrot.lane.b32.xlu1 %v3405_v1, %s3319_s27  ;;  %v3435_v3 = vld [vmem:[%s3399_s26 + $0x18] sm:$0xff]  ;;  %v3438_v4 = vld [vmem:[%s3399_s26 + $0x20] sm:$0xff]  ;;  %s3330_s13 = smov 91   ;;  %s3331_s14 = smov 99   ;;  %vm5250_vm11 = vcmp.lt.s32.totalorder %v3535_v7, 90  ;;  %vm5249_vm12 = vcmp.lt.s32.totalorder %v3535_v7, 91 }
  0x13   : > { %s3332_s15 = smov 100   ;;  %s3333_s16 = smov 101   ;;  %vm5248_vm13 = vcmp.lt.s32.totalorder %v3535_v7, 99  ;;  %vm5247_vm14 = vcmp.lt.s32.totalorder %v3535_v7, 100  ;;  %vm5246_vm15 = vcmp.lt.s32.totalorder %v3535_v7, 101 }
  0x14   : > { %s3334_s17 = smov 109   ;;  %s3335_s18 = smov 110  }
  0x15   : > { %s5222_s19 = smov 111   ;;  %s5224_s20 = smov 17  }
  0x16   : > { %650 = vrot.lane.b32.xlu0 %v3412_v2, %s3319_s27  ;;  %627 = vrot.lane.b32.xlu1 %v3402_v0, %s3320_s28  ;;  %s5226_s23 = smov 18   ;;  %s5228_s24 = smov 19  }
  0x17   : > { %s5231_s25 = smov 27  }
  0x1a   : > { %629 = vrot.lane.b32.xlu0 %v3412_v2, %s3320_s28  ;;  %625 = vrot.lane.b32.xlu1 %v3405_v1, %s3320_s28 }
  0x1e   : > { %606 = vrot.lane.b32.xlu0 %v3402_v0, %s3321_s29  ;;  %608 = vrot.lane.b32.xlu1 %v3412_v2, %s3321_s29 }
  0x22   : > { %604 = vrot.lane.b32.xlu0 %v3405_v1, %s3321_s29  ;;  %585 = vrot.lane.b32.xlu1 %v3402_v0, %s3322_s30 }
  0x26   : > { %587 = vrot.lane.b32.xlu0 %v3412_v2, %s3322_s30  ;;  %583 = vrot.lane.b32.xlu1 %v3405_v1, %s3322_s30 }
  0x2a   : > { %652 = vrot.lane.b32.xlu0 %v3435_v3, %s3319_s27  ;;  %654 = vrot.lane.b32.xlu1 %v3438_v4, %s3319_s27 }
  0x2e   : > { %631 = vrot.lane.b32.xlu0 %v3435_v3, %s3320_s28  ;;  %633 = vrot.lane.b32.xlu1 %v3438_v4, %s3320_s28 }
  0x32   : > { %557 = vrot.lane.b32.xlu0 %v3405_v1, %s3323_s7  ;;  %559 = vrot.lane.b32.xlu1 %v3402_v0, %s3323_s7 }
  0x36   : > { %565 = vrot.lane.b32.xlu0 %v3438_v4, %s3323_s7  ;;  %610 = vrot.lane.b32.xlu1 %v3435_v3, %s3321_s29 }
  0x3a   : > { %612 = vrot.lane.b32.xlu0 %v3438_v4, %s3321_s29  ;;  %536 = vrot.lane.b32.xlu1 %v3405_v1, %s3324_s8 }
  0x3e   : > { %538 = vrot.lane.b32.xlu0 %v3402_v0, %s3324_s8  ;;  %544 = vrot.lane.b32.xlu1 %v3438_v4, %s3324_s8 }
  0x42   : > { %589 = vrot.lane.b32.xlu0 %v3435_v3, %s3322_s30  ;;  %591 = vrot.lane.b32.xlu1 %v3438_v4, %s3322_s30 }
  0x46   : > { %515 = vrot.lane.b32.xlu0 %v3405_v1, %s3326_s9  ;;  %517 = vrot.lane.b32.xlu1 %v3402_v0, %s3326_s9 }
  0x4a   : > { %523 = vrot.lane.b32.xlu0 %v3438_v4, %s3326_s9  ;;  %494 = vrot.lane.b32.xlu1 %v3405_v1, %s3327_s10 }
  0x4e   : > { %496 = vrot.lane.b32.xlu0 %v3402_v0, %s3327_s10  ;;  %502 = vrot.lane.b32.xlu1 %v3438_v4, %s3327_s10 }
  0x52   : > { %561 = vrot.lane.b32.xlu0 %v3412_v2, %s3323_s7  ;;  %563 = vrot.lane.b32.xlu1 %v3435_v3, %s3323_s7 }
  0x56   : > { %540 = vrot.lane.b32.xlu0 %v3412_v2, %s3324_s8  ;;  %542 = vrot.lane.b32.xlu1 %v3435_v3, %s3324_s8 }
  0x5a   : > { %519 = vrot.lane.b32.xlu0 %v3412_v2, %s3326_s9  ;;  %521 = vrot.lane.b32.xlu1 %v3435_v3, %s3326_s9 }
  0x5e   : > { %498 = vrot.lane.b32.xlu0 %v3412_v2, %s3327_s10  ;;  %500 = vrot.lane.b32.xlu1 %v3435_v3, %s3327_s10 }
  0x62   : > { %427 = vrot.lane.b32.xlu0 %v3405_v1, %s3328_s11  ;;  %429 = vrot.lane.b32.xlu1 %v3402_v0, %s3328_s11 }
  0x66   : > { %435 = vrot.lane.b32.xlu0 %v3438_v4, %s3328_s11  ;;  %406 = vrot.lane.b32.xlu1 %v3405_v1, %s3329_s12 }
  0x6a   : > { %408 = vrot.lane.b32.xlu0 %v3402_v0, %s3329_s12  ;;  %414 = vrot.lane.b32.xlu1 %v3438_v4, %s3329_s12 }
  0x6e   : > { %385 = vrot.lane.b32.xlu0 %v3405_v1, %s3330_s13  ;;  %387 = vrot.lane.b32.xlu1 %v3402_v0, %s3330_s13 }
  0x72   : > { %393 = vrot.lane.b32.xlu0 %v3438_v4, %s3330_s13  ;;  %364 = vrot.lane.b32.xlu1 %v3405_v1, %s3331_s14 }
  0x76   : > { %366 = vrot.lane.b32.xlu0 %v3402_v0, %s3331_s14  ;;  %372 = vrot.lane.b32.xlu1 %v3438_v4, %s3331_s14 }
  0x7a   : > { %343 = vrot.lane.b32.xlu0 %v3405_v1, %s3332_s15  ;;  %345 = vrot.lane.b32.xlu1 %v3402_v0, %s3332_s15 }
  0x7e   : > { %351 = vrot.lane.b32.xlu0 %v3438_v4, %s3332_s15  ;;  %322 = vrot.lane.b32.xlu1 %v3405_v1, %s3333_s16 }
  0x82   : > { %324 = vrot.lane.b32.xlu0 %v3402_v0, %s3333_s16  ;;  %330 = vrot.lane.b32.xlu1 %v3438_v4, %s3333_s16 }
  0x84   : > { %v649_v8 = vpop.permute.xlu0 %648  ;;  %v3537_v9 = vpop.permute.xlu1 %646 }
  0x85   : > { %v660_v13 = vsel %vm656_vm0, %v3537_v9, %v649_v8 }
  0x86   : > { %431 = vrot.lane.b32.xlu0 %v3412_v2, %s3328_s11  ;;  %433 = vrot.lane.b32.xlu1 %v3435_v3, %s3328_s11 }
  0x88   : > { %v651_v10 = vpop.permute.xlu0 %650  ;;  %v628_v11 = vpop.permute.xlu1 %627 }
  0x89   : > { %v659_v12 = vsel %vm656_vm0, %v649_v8, %v651_v10  ;;  %v3708_v8 = vld [vmem:[%s5216_s2 + $0x8] sm:$0xff] }
  0x8a   : > { %732 = vmatprep.subr.mxu0 %v659_v12  ;;  %301 = vrot.lane.b32.xlu0 %v3405_v1, %s3334_s17 }
  0x8b   : > { %303 = vrot.lane.b32.xlu1 %v3402_v0, %s3334_s17  ;;  %733 = vmatpush1.msra.mxu0 %v660_v13 }
  0x8c   : > { %v630_v14 = vpop.permute.xlu0 %629  ;;  %v3554_v15 = vpop.permute.xlu1 %625 }
  0x8d   : > { %v638_v16 = vsel %vm635_vm1, %v628_v11, %v630_v14  ;;  %v639_v17 = vsel %vm635_vm1, %v3554_v15, %v628_v11 }
  0x8e   : > { %309 = vrot.lane.b32.xlu0 %v3438_v4, %s3334_s17  ;;  %734 = vmatprep.subr.mxu0 %v638_v16 }
  0x8f   : > { %410 = vrot.lane.b32.xlu1 %v3412_v2, %s3329_s12  ;;  %735 = vmatpush1.msra.mxu0 %v639_v17 }
  0x90   : > { %v607_v18 = vpop.permute.xlu0 %606  ;;  %v609_v19 = vpop.permute.xlu1 %608 }
  0x91   : > { %v617_v20 = vsel %vm614_vm2, %v607_v18, %v609_v19 }
  0x92   : > { %412 = vrot.lane.b32.xlu0 %v3435_v3, %s3329_s12  ;;  %736 = vmatprep.subr.mxu0 %v617_v20 }
  0x93   : > { %280 = vrot.lane.b32.xlu1 %v3405_v1, %s3335_s18 }
  0x94   : > { %v3572_v21 = vpop.permute.xlu0 %604  ;;  %v586_v22 = vpop.permute.xlu1 %585 }
  0x95   : > { %v618_v23 = vsel %vm614_vm2, %v3572_v21, %v607_v18 }
  0x96   : > { %282 = vrot.lane.b32.xlu0 %v3402_v0, %s3335_s18  ;;  %737 = vmatpush1.msra.mxu0 %v618_v23 }
  0x97   : > { %288 = vrot.lane.b32.xlu1 %v3438_v4, %s3335_s18 }
  0x98   : > { %v588_v24 = vpop.permute.xlu0 %587  ;;  %v3582_v25 = vpop.permute.xlu1 %583 }
  0x99   : > { %v596_v26 = vsel %vm593_vm3, %v586_v22, %v588_v24  ;;  %v597_v27 = vsel %vm593_vm3, %v3582_v25, %v586_v22 }
  0x9a   : > { %389 = vrot.lane.b32.xlu0 %v3412_v2, %s3330_s13  ;;  %738 = vmatprep.subr.mxu0 %v596_v26 }
  0x9b   : > { %391 = vrot.lane.b32.xlu1 %v3435_v3, %s3330_s13  ;;  %739 = vmatpush1.msra.mxu0 %v597_v27 }
  0x9c   : > { %v653_v28 = vpop.permute.xlu0 %652  ;;  %v3593_v29 = vpop.permute.xlu1 %654  ;;  %740 = vmatprep.subr.mxu0 %v3402_v0 }
  0x9d   : > { %v657_v30 = vsel %vm656_vm0, %v653_v28, %v3593_v29  ;;  %v658_v31 = vsel %vm656_vm0, %v651_v10, %v653_v28  ;;  %741 = vmatpush1.msra.mxu0 %v3405_v1  ;;  %v661_v12 = vsel %vm656_vm0, %v3593_v29, %v3537_v9 }
  0x9e   : > { %257 = vrot.lane.b32.xlu0 %v3405_v1, %s5222_s19  ;;  %803 = vmatprep.subr.mxu1 %v657_v30 }
  0x9f   : > { %259 = vrot.lane.b32.xlu1 %v3402_v0, %s5222_s19  ;;  %804 = vmatpush1.msra.mxu1 %v658_v31 }
  0xa0   : > { %v632_v32 = vpop.permute.xlu0 %631  ;;  %v3606_v33 = vpop.permute.xlu1 %633 }
  0xa1   : > { %v636_v34 = vsel %vm635_vm1, %v632_v32, %v3606_v33  ;;  %v637_v35 = vsel %vm635_vm1, %v630_v14, %v632_v32  ;;  %v640_v9 = vsel %vm635_vm1, %v3606_v33, %v3554_v15 }
  0xa2   : > { %265 = vrot.lane.b32.xlu0 %v3438_v4, %s5222_s19  ;;  %805 = vmatprep.subr.mxu1 %v636_v34 }
  0xa3   : > { %368 = vrot.lane.b32.xlu1 %v3412_v2, %s3331_s14  ;;  %806 = vmatpush1.msra.mxu1 %v637_v35 }
  0xa4   : > { %v558_v36 = vpop.permute.xlu0 %557  ;;  %v3618_v37 = vpop.permute.xlu1 %559 }
  0xa5   : > { %v571_v38 = vsel %vm567_vm4, %v558_v36, %v3618_v37 }
  0xa6   : > { %370 = vrot.lane.b32.xlu0 %v3435_v3, %s3331_s14  ;;  %742 = vmatprep.subr.mxu0 %v571_v38 }
  0xa7   : > { %347 = vrot.lane.b32.xlu1 %v3412_v2, %s3332_s15 }
  0xa8   : > { %v3627_v39 = vpop.permute.xlu0 %565  ;;  %v611_v40 = vpop.permute.xlu1 %610 }
  0xa9   : > { %v572_v41 = vsel %vm567_vm4, %v3627_v39, %v558_v36  ;;  %v616_v45 = vsel %vm614_vm2, %v609_v19, %v611_v40 }
  0xaa   : > { %349 = vrot.lane.b32.xlu0 %v3435_v3, %s3332_s15  ;;  %743 = vmatpush1.msra.mxu0 %v572_v41 }
  0xab   : > { %326 = vrot.lane.b32.xlu1 %v3412_v2, %s3333_s16 }
  0xac   : > { %v3636_v42 = vpop.permute.xlu0 %612  ;;  %v537_v43 = vpop.permute.xlu1 %536 }
  0xad   : > { %v615_v44 = vsel %vm614_vm2, %v611_v40, %v3636_v42  ;;  %v619_v18 = vsel %vm614_vm2, %v3636_v42, %v3572_v21 }
  0xae   : > { %328 = vrot.lane.b32.xlu0 %v3435_v3, %s3333_s16  ;;  %807 = vmatprep.subr.mxu1 %v615_v44 }
  0xaf   : > { %305 = vrot.lane.b32.xlu1 %v3412_v2, %s3334_s17  ;;  %808 = vmatpush1.msra.mxu1 %v616_v45 }
  0xb0   : > { %v3648_v46 = vpop.permute.xlu0 %538  ;;  %v3650_v47 = vpop.permute.xlu1 %544 }
  0xb1   : > { %v550_v48 = vsel %vm5234_vm5, %v537_v43, %v3648_v46  ;;  %v551_v49 = vsel %vm5234_vm5, %v3650_v47, %v537_v43 }
  0xb2   : > { %307 = vrot.lane.b32.xlu0 %v3435_v3, %s3334_s17  ;;  %744 = vmatprep.subr.mxu0 %v550_v48 }
  0xb3   : > { %284 = vrot.lane.b32.xlu1 %v3412_v2, %s3335_s18  ;;  %745 = vmatpush1.msra.mxu0 %v551_v49 }
  0xb4   : > { %v590_v50 = vpop.permute.xlu0 %589  ;;  %v3662_v51 = vpop.permute.xlu1 %591 }
  0xb5   : > { %v594_v52 = vsel %vm593_vm3, %v590_v50, %v3662_v51  ;;  %v595_v53 = vsel %vm593_vm3, %v588_v24, %v590_v50  ;;  %v598_v15 = vsel %vm593_vm3, %v3662_v51, %v3582_v25 }
  0xb6   : > { %286 = vrot.lane.b32.xlu0 %v3435_v3, %s3335_s18  ;;  %809 = vmatprep.subr.mxu1 %v594_v52 }
  0xb7   : > { %261 = vrot.lane.b32.xlu1 %v3412_v2, %s5222_s19  ;;  %810 = vmatpush1.msra.mxu1 %v595_v53 }
  0xb8   : > { %v516_v54 = vpop.permute.xlu0 %515  ;;  %v3674_v55 = vpop.permute.xlu1 %517  ;;  %811 = vmatprep.subr.mxu1 %v3435_v3 }
  0xb9   : > { %v529_v56 = vsel %vm5233_vm6, %v516_v54, %v3674_v55  ;;  %812 = vmatpush1.msra.mxu1 %v3412_v2 }
  0xba   : > { %263 = vrot.lane.b32.xlu0 %v3435_v3, %s5222_s19  ;;  %746 = vmatprep.subr.mxu0 %v529_v56  ;;  %s5241_s19 = smov 28  }
  0xbb   : > { %1315 = vrot.lane.b32.xlu1 %v3402_v0, %s5224_s20 }
  0xbc   : > { %v3685_v57 = vpop.permute.xlu0 %523  ;;  %v495_v58 = vpop.permute.xlu1 %494 }
  0xbd   : > { %v530_v59 = vsel %vm5233_vm6, %v3685_v57, %v516_v54 }
  0xbe   : > { %1317 = vrot.lane.b32.xlu0 %v3412_v2, %s5224_s20  ;;  %747 = vmatpush1.msra.mxu0 %v530_v59 }
  0xbf   : > { %1313 = vrot.lane.b32.xlu1 %v3405_v1, %s5224_s20 }
  0xc0   : > { %v3695_v60 = vpop.permute.xlu0 %496  ;;  %v3697_v61 = vpop.permute.xlu1 %502 }
  0xc1   : > { %v508_v62 = vsel %vm5230_vm7, %v495_v58, %v3695_v60  ;;  %v509_v63 = vsel %vm5230_vm7, %v3697_v61, %v495_v58 }
  0xc2   : > { %1294 = vrot.lane.b32.xlu0 %v3402_v0, %s5226_s23  ;;  %748 = vmatprep.subr.mxu0 %v508_v62 }
  0xc3   : > { %1296 = vrot.lane.b32.xlu1 %v3412_v2, %s5226_s23  ;;  %749 = vmatpush1.msra.mxu0 %v509_v63 }
  0xc4   : > { %v562_v10 = vpop.permute.xlu0 %561  ;;  %3141 = vmatprep.subr.mxu0 %v5255_v5  ;;  %v564_v11 = vpop.permute.xlu1 %563  ;;  %3058 = vmatmul.mubr.msk.f32.vlgmr.msra.gmra.mxu0 %vm714_vm8, %v3708_v8 }
  0xc5   : > { %3142 = vmatpush3.msra.mxu0 %v661_v12  ;;  %v569_v13 = vsel %vm567_vm4, %v562_v10, %v564_v11  ;;  %v570_v14 = vsel %vm567_vm4, %v3618_v37, %v562_v10  ;;  %3159 = vmatprep.mubr.msk.f32.mxu0 %vm3339_vm9, %v5255_v5  ;;  %v568_v25 = vsel %vm567_vm4, %v564_v11, %v3627_v39 }
  0xc6   : > { %1292 = vrot.lane.b32.xlu0 %v3405_v1, %s5226_s23  ;;  %813 = vmatprep.subr.mxu1 %v569_v13 }
  0xc7   : > { %1273 = vrot.lane.b32.xlu1 %v3402_v0, %s5228_s24  ;;  %3143 = vmatprep.subr.mxu0 %v5255_v5 }
  0xc8   : > { %814 = vmatpush1.msra.mxu1 %v570_v14  ;;  %3144 = vmatpush3.msra.mxu0 %v640_v9  ;;  %v541_v16 = vpop.permute.xlu0 %540  ;;  %v543_v17 = vpop.permute.xlu1 %542 }
  0xc9   : > { %3145 = vmatprep.subr.mxu0 %v5255_v5  ;;  %v548_v19 = vsel %vm5234_vm5, %v541_v16, %v543_v17  ;;  %v549_v20 = vsel %vm5234_vm5, %v3648_v46, %v541_v16  ;;  %v547_v29 = vsel %vm5234_vm5, %v543_v17, %v3650_v47  ;;  %vm5244_vm5 = vcmp.lt.s32.totalorder %v3535_v7, 111 }
  0xca   : > { %3146 = vmatpush3.msra.mxu0 %v619_v18  ;;  %1275 = vrot.lane.b32.xlu0 %v3412_v2, %s5228_s24 }
  0xcb   : > { %1271 = vrot.lane.b32.xlu1 %v3405_v1, %s5228_s24  ;;  %815 = vmatprep.subr.mxu1 %v548_v19 }
  0xcc   : > { %3147 = vmatprep.subr.mxu0 %v5255_v5  ;;  %816 = vmatpush1.msra.mxu1 %v549_v20  ;;  %v520_v21 = vpop.permute.xlu0 %519  ;;  %v522_v22 = vpop.permute.xlu1 %521 }
  0xcd   : > { %3148 = vmatpush3.msra.mxu0 %v598_v15  ;;  %v527_v23 = vsel %vm5233_vm6, %v520_v21, %v522_v22  ;;  %v528_v24 = vsel %vm5233_vm6, %v3674_v55, %v520_v21  ;;  %v526_v31 = vsel %vm5233_vm6, %v522_v22, %v3685_v57  ;;  %vm5243_vm6 = vcmp.lt.s32.totalorder %v3535_v7, 110 }
  0xce   : > { %3149 = vmatprep.subr.mxu0 %v5255_v5  ;;  %1252 = vrot.lane.b32.xlu0 %v3402_v0, %s5231_s25 }
  0xcf   : > { %3150 = vmatpush3.msra.mxu0 %v3438_v4  ;;  %1254 = vrot.lane.b32.xlu1 %v3412_v2, %s5231_s25 }
  0xd0   : > { %817 = vmatprep.subr.mxu1 %v527_v23  ;;  %3151 = vmatprep.subr.mxu0 %v5255_v5  ;;  %v499_v26 = vpop.permute.xlu0 %498  ;;  %v501_v27 = vpop.permute.xlu1 %500  ;;  %v3347_v23 = vmov 0  }
  0xd1   : > { %818 = vmatpush1.msra.mxu1 %v528_v24  ;;  %3152 = vmatpush3.msra.mxu0 %v568_v25  ;;  %v506_v28 = vsel %vm5230_vm7, %v499_v26, %v501_v27  ;;  %v507_v30 = vsel %vm5230_vm7, %v3695_v60, %v499_v26  ;;  %v505_v35 = vsel %vm5230_vm7, %v501_v27, %v3697_v61  ;;  %vm5245_vm7 = vcmp.lt.s32.totalorder %v3535_v7, 109 }
  0xd2   : > { %3153 = vmatprep.subr.mxu0 %v5255_v5  ;;  %1250 = vrot.lane.b32.xlu0 %v3405_v1, %s5231_s25 }
  0xd3   : > { %3154 = vmatpush3.msra.mxu0 %v547_v29  ;;  %1319 = vrot.lane.b32.xlu1 %v3435_v3, %s5224_s20 }
  0xd4   : > { %819 = vmatprep.subr.mxu1 %v506_v28  ;;  %3155 = vmatprep.subr.mxu0 %v5255_v5  ;;  %v428_v32 = vpop.permute.xlu0 %427  ;;  %v3789_v33 = vpop.permute.xlu1 %429 }
  0xd5   : > { %820 = vmatpush1.msra.mxu1 %v507_v30  ;;  %3156 = vmatpush3.msra.mxu0 %v526_v31  ;;  %v441_v34 = vsel %vm5251_vm10, %v428_v32, %v3789_v33  ;;  %v1601_v30 = vld [vmem:[%s5217_s3] sm:$0xff] }
  0xd6   : > { %3157 = vmatprep.subr.mxu0 %v5255_v5  ;;  %1321 = vrot.lane.b32.xlu0 %v3438_v4, %s5224_s20  ;;  %s5239_s20 = smov 29  }
  0xd7   : > { %3158 = vmatpush3.msra.mxu0 %v505_v35  ;;  %1231 = vrot.lane.b32.xlu1 %v3402_v0, %s5241_s19 }
  0xd8   : > { %947 = vmatprep.subr.mxu1 %v441_v34  ;;  %v3802_v36 = vpop.permute.xlu0 %435  ;;  %v407_v37 = vpop.permute.xlu1 %406  ;;  %3059 = vmatmul.mubr.msk.f32.vlgmr.msra.gmra.mxu1 %vm714_vm8, %v3708_v8 }
  0xd9   : > { %v442_v38 = vsel %vm5251_vm10, %v3802_v36, %v428_v32  ;;  %3160 = vmatmul.mubr.msk.f32.vlgmr.msra.gmra.mxu0 %vm714_vm8, %v3708_v8  ;;  %997 = vmatprep.mubr.f32.mxu1 %v5255_v5  ;;  %v3982_v32 = vld [vmem:[%s5216_s2] sm:$0xff] }
  0xda   : > { %1233 = vrot.lane.b32.xlu0 %v3412_v2, %s5241_s19  ;;  %948 = vmatpush1.msra.mxu1 %v442_v38 }
  0xdb   : > { %1229 = vrot.lane.b32.xlu1 %v3405_v1, %s5241_s19  ;;  %1068 = vmatprep.mubr.f32.mxu0 %v5255_v5 }
  0xdc   : > { %v3818_v39 = vpop.permute.xlu0 %408  ;;  %v3820_v40 = vpop.permute.xlu1 %414  ;;  %3305 = vset.pattern.permute.xlu0 %v3347_v23 }
  0xdd   : > { %v420_v41 = vsel %vm5250_vm11, %v407_v37, %v3818_v39  ;;  %v421_v42 = vsel %vm5250_vm11, %v3820_v40, %v407_v37 }
  0xde   : > { %1298 = vrot.lane.b32.xlu0 %v3435_v3, %s5226_s23  ;;  %949 = vmatprep.subr.mxu1 %v420_v41 }
  0xdf   : > { %1300 = vrot.lane.b32.xlu1 %v3438_v4, %s5226_s23  ;;  %950 = vmatpush1.msra.mxu1 %v421_v42  ;;  %s5235_s23 = smov 37  }
  0xe0   : > { %v386_v43 = vpop.permute.xlu0 %385  ;;  %v3833_v44 = vpop.permute.xlu1 %387 }
  0xe1   : > { %v399_v45 = vsel %vm5249_vm12, %v386_v43, %v3833_v44 }
  0xe2   : > { %1210 = vrot.lane.b32.xlu0 %v3402_v0, %s5239_s20  ;;  %951 = vmatprep.subr.mxu1 %v399_v45 }
  0xe3   : > { %1212 = vrot.lane.b32.xlu1 %v3412_v2, %s5239_s20 }
  0xe4   : > { %v3842_v46 = vpop.permute.xlu0 %393  ;;  %v365_v47 = vpop.permute.xlu1 %364 }
  0xe5   : > { %v400_v48 = vsel %vm5249_vm12, %v3842_v46, %v386_v43 }
  0xe6   : > { %1208 = vrot.lane.b32.xlu0 %v3405_v1, %s5239_s20  ;;  %952 = vmatpush1.msra.mxu1 %v400_v48 }
  0xe7   : > { %1277 = vrot.lane.b32.xlu1 %v3435_v3, %s5228_s24 }
  0xe8   : > { %v3852_v49 = vpop.permute.xlu0 %366  ;;  %v3854_v50 = vpop.permute.xlu1 %372 }
  0xe9   : > { %v378_v51 = vsel %vm5248_vm13, %v365_v47, %v3852_v49  ;;  %v379_v52 = vsel %vm5248_vm13, %v3854_v50, %v365_v47 }
  0xea   : > { %1279 = vrot.lane.b32.xlu0 %v3438_v4, %s5228_s24  ;;  %953 = vmatprep.subr.mxu1 %v378_v51  ;;  %s5237_s24 = smov 38  }
  0xeb   : > { %1189 = vrot.lane.b32.xlu1 %v3402_v0, %s5235_s23  ;;  %954 = vmatpush1.msra.mxu1 %v379_v52 }
  0xec   : > { %v344_v53 = vpop.permute.xlu0 %343  ;;  %v3867_v54 = vpop.permute.xlu1 %345 }
  0xed   : > { %v357_v55 = vsel %vm5247_vm14, %v344_v53, %v3867_v54 }
  0xee   : > { %1191 = vrot.lane.b32.xlu0 %v3412_v2, %s5235_s23  ;;  %955 = vmatprep.subr.mxu1 %v357_v55 }
  0xef   : > { %1187 = vrot.lane.b32.xlu1 %v3405_v1, %s5235_s23 }
  0xf0   : > { %v3876_v56 = vpop.permute.xlu0 %351  ;;  %v323_v57 = vpop.permute.xlu1 %322 }
  0xf1   : > { %v358_v58 = vsel %vm5247_vm14, %v3876_v56, %v344_v53 }
  0xf2   : > { %1256 = vrot.lane.b32.xlu0 %v3435_v3, %s5231_s25  ;;  %956 = vmatpush1.msra.mxu1 %v358_v58 }
  0xf3   : > { %1258 = vrot.lane.b32.xlu1 %v3438_v4, %s5231_s25  ;;  %s3346_s25 = smov 39  }
  0xf4   : > { %v3886_v59 = vpop.permute.xlu0 %324  ;;  %v3888_v60 = vpop.permute.xlu1 %330 }
  0xf5   : > { %v336_v61 = vsel %vm5246_vm15, %v323_v57, %v3886_v59  ;;  %v337_v62 = vsel %vm5246_vm15, %v3888_v60, %v323_v57 }
  0xf6   : > { %1168 = vrot.lane.b32.xlu0 %v3402_v0, %s5237_s24  ;;  %957 = vmatprep.subr.mxu1 %v336_v61 }
  0xf7   : > { %1170 = vrot.lane.b32.xlu1 %v3412_v2, %s5237_s24  ;;  %958 = vmatpush1.msra.mxu1 %v337_v62 }
  0xf8   : > { %v432_v63 = vpop.permute.xlu0 %431  ;;  %v3900_v8 = vpop.permute.xlu1 %433 }
  0xf9   : > { %v439_v10 = vsel %vm5251_vm10, %v432_v63, %v3900_v8  ;;  %v440_v11 = vsel %vm5251_vm10, %v3789_v33, %v432_v63 }
  0xfa   : > { %1166 = vrot.lane.b32.xlu0 %v3405_v1, %s5237_s24  ;;  %1018 = vmatprep.subr.mxu0 %v439_v10 }
  0xfb   : > { %1235 = vrot.lane.b32.xlu1 %v3435_v3, %s5241_s19  ;;  %1019 = vmatpush1.msra.mxu0 %v440_v11 }
  0xfc   : > { %v302_v12 = vpop.permute.xlu0 %301 }
  0xfd   : > { %v3913_v13 = vpop.permute.xlu1 %303 }
  0xfe   : > { %1237 = vrot.lane.b32.xlu0 %v3438_v4, %s5241_s19  ;;  %v315_v14 = vsel %vm5245_vm7, %v302_v12, %v3913_v13 }
  0xff   : > { %1147 = vrot.lane.b32.xlu1 %v3402_v0, %s3346_s25  ;;  %959 = vmatprep.subr.mxu1 %v315_v14 }
 0x100   : > { %v3922_v9 = vpop.permute.xlu0 %309 }
 0x101   : > { %v411_v16 = vpop.permute.xlu1 %410  ;;  %v316_v17 = vsel %vm5245_vm7, %v3922_v9, %v302_v12 }
 0x102   : > { %1149 = vrot.lane.b32.xlu0 %v3412_v2, %s3346_s25  ;;  %960 = vmatpush1.msra.mxu1 %v316_v17  ;;  %v419_v20 = vsel %vm5250_vm11, %v3818_v39, %v411_v16 }
 0x103   : > { %1145 = vrot.lane.b32.xlu1 %v3405_v1, %s3346_s25 }
 0x104   : > { %v413_v18 = vpop.permute.xlu0 %412 }
 0x105   : > { %v281_v19 = vpop.permute.xlu1 %280  ;;  %v418_v0 = vsel %vm5250_vm11, %v411_v16, %v413_v18  ;;  %v417_v38 = vsel %vm5250_vm11, %v413_v18, %v3820_v40  ;;  %vm5253_vm11 = vcmp.lt.s32.totalorder %v3535_v7, 38 }
 0x106   : > { %1214 = vrot.lane.b32.xlu0 %v3435_v3, %s5239_s20  ;;  %1020 = vmatprep.subr.mxu0 %v418_v0 }
 0x107   : > { %1216 = vrot.lane.b32.xlu1 %v3438_v4, %s5239_s20  ;;  %1021 = vmatpush1.msra.mxu0 %v419_v20 }
 0x108   : > { %v3941_v1 = vpop.permute.xlu0 %282 }
 0x109   : > { %v3943_v2 = vpop.permute.xlu1 %288  ;;  %v294_v15 = vsel %vm5243_vm6, %v281_v19, %v3941_v1 }
 0x10a   : > { %1193 = vrot.lane.b32.xlu0 %v3435_v3, %s5235_s23  ;;  %961 = vmatprep.subr.mxu1 %v294_v15  ;;  %v295_v21 = vsel %vm5243_vm6, %v3943_v2, %v281_v19 }
 0x10b   : > { %1195 = vrot.lane.b32.xlu1 %v3438_v4, %s5235_s23  ;;  %962 = vmatpush1.msra.mxu1 %v295_v21  ;;  %s5358_s23 = smul.u32 40, %s5360_s22 }
 0x10c   : > { %v390_v22 = vpop.permute.xlu0 %389 }
 0x10d   : > { %v392_v24 = vpop.permute.xlu1 %391  ;;  %v398_v25 = vsel %vm5249_vm12, %v3833_v44, %v390_v22 }
 0x10e   : > { %1172 = vrot.lane.b32.xlu0 %v3435_v3, %s5237_s24  ;;  %v397_v26 = vsel %vm5249_vm12, %v390_v22, %v392_v24  ;;  %v396_v39 = vsel %vm5249_vm12, %v392_v24, %v3842_v46  ;;  %vm5254_vm12 = vcmp.lt.s32.totalorder %v3535_v7, 37 }
 0x10f   : > { %1174 = vrot.lane.b32.xlu1 %v3438_v4, %s5237_s24  ;;  %1022 = vmatprep.subr.mxu0 %v397_v26  ;;  %s251_s24 = scalar_lea.vmem %s5220_s6, %s5358_s23 }
 0x110   : > { %1023 = vmatpush1.msra.mxu0 %v398_v25  ;;  %v258_v27 = vpop.permute.xlu0 %257 }
 0x111   : > { %v3965_v28 = vpop.permute.xlu1 %259 }
 0x112   : > { %1151 = vrot.lane.b32.xlu0 %v3435_v3, %s3346_s25  ;;  %v273_v29 = vsel %vm5244_vm5, %v258_v27, %v3965_v28 }
 0x113   : > { %1153 = vrot.lane.b32.xlu1 %v3438_v4, %s3346_s25  ;;  %963 = vmatprep.subr.mxu1 %v273_v29  ;;  %v438_v4 = vsel %vm5251_vm10, %v3900_v8, %v3802_v36  ;;  %vm5252_vm10 = vcmp.lt.s32.totalorder %v3535_v7, 39 }
 0x114   : > { %v3977_v31 = vpop.permute.xlu0 %265 }
 0x115   : > { %v369_v3 = vpop.permute.xlu1 %368  ;;  %v274_v33 = vsel %vm5244_vm5, %v3977_v31, %v258_v27 }
 0x116   : > { %964 = vmatpush1.msra.mxu1 %v274_v33  ;;  %1604 = vperm.xlu0 %3305, %v1601_v30   ;;  %v377_v36 = vsel %vm5248_vm13, %v3852_v49, %v369_v3 }
 0x117   : > { %3162 = vmatprep.subr.mxu1 %v5255_v5  ;;  %3061 = vmatmul.mubr.msk.f32.vlgmr.msra.gmra.mxu1 %vm714_vm8, %v3982_v32 }
 0x118   : > { %v371_v34 = vpop.permute.xlu0 %370  ;;  %3163 = vmatpush3.msra.mxu1 %v438_v4  ;;  %3180 = vmatprep.mubr.msk.f32.mxu1 %vm3339_vm9, %v5255_v5 }
 0x119   : > { %v348_v35 = vpop.permute.xlu1 %347  ;;  %3164 = vmatprep.subr.mxu1 %v5255_v5  ;;  %v376_v37 = vsel %vm5248_vm13, %v369_v3, %v371_v34  ;;  %v375_v43 = vsel %vm5248_vm13, %v371_v34, %v3854_v50  ;;  %vm1218_vm13 = vcmp.lt.s32.totalorder %v3535_v7, 29 }
 0x11a   : > { %1024 = vmatprep.subr.mxu0 %v376_v37  ;;  %3165 = vmatpush3.msra.mxu1 %v417_v38  ;;  %v356_v44 = vsel %vm5247_vm14, %v3867_v54, %v348_v35 }
 0x11b   : > { %1025 = vmatpush1.msra.mxu0 %v377_v36  ;;  %3166 = vmatprep.subr.mxu1 %v5255_v5 }
 0x11c   : > { %v350_v41 = vpop.permute.xlu0 %349  ;;  %3167 = vmatpush3.msra.mxu1 %v396_v39 }
 0x11d   : > { %v327_v42 = vpop.permute.xlu1 %326  ;;  %3168 = vmatprep.subr.mxu1 %v5255_v5  ;;  %v355_v40 = vsel %vm5247_vm14, %v348_v35, %v350_v41  ;;  %v354_v45 = vsel %vm5247_vm14, %v350_v41, %v3876_v56  ;;  %vm1239_vm14 = vcmp.lt.s32.totalorder %v3535_v7, 28 }
 0x11e   : > { %1026 = vmatprep.subr.mxu0 %v355_v40  ;;  %3169 = vmatpush3.msra.mxu1 %v375_v43  ;;  %v335_v50 = vsel %vm5246_vm15, %v3886_v59, %v327_v42 }
 0x11f   : > { %1027 = vmatpush1.msra.mxu0 %v356_v44  ;;  %3170 = vmatprep.subr.mxu1 %v5255_v5 }
 0x120   : > { %v329_v46 = vpop.permute.xlu0 %328  ;;  %3171 = vmatpush3.msra.mxu1 %v354_v45 }
 0x121   : > { %v306_v47 = vpop.permute.xlu1 %305  ;;  %3172 = vmatprep.subr.mxu1 %v5255_v5  ;;  %v334_v48 = vsel %vm5246_vm15, %v327_v42, %v329_v46  ;;  %v333_v49 = vsel %vm5246_vm15, %v329_v46, %v3888_v60  ;;  %vm1260_vm15 = vcmp.lt.s32.totalorder %v3535_v7, 27 }
 0x122   : > { %1028 = vmatprep.subr.mxu0 %v334_v48  ;;  %3173 = vmatpush3.msra.mxu1 %v333_v49  ;;  %v314_v55 = vsel %vm5245_vm7, %v3913_v13, %v306_v47 }
 0x123   : > { %1029 = vmatpush1.msra.mxu0 %v335_v50  ;;  %3174 = vmatprep.subr.mxu1 %v5255_v5 }
 0x124   : > { %v308_v51 = vpop.permute.xlu0 %307 }
 0x125   : > { %v285_v52 = vpop.permute.xlu1 %284  ;;  %v313_v53 = vsel %vm5245_vm7, %v306_v47, %v308_v51  ;;  %v312_v54 = vsel %vm5245_vm7, %v308_v51, %v3922_v9  ;;  %vm1281_vm7 = vcmp.lt.s32.totalorder %v3535_v7, 19 }
 0x126   : > { %1030 = vmatprep.subr.mxu0 %v313_v53  ;;  %3175 = vmatpush3.msra.mxu1 %v312_v54  ;;  %v293_v60 = vsel %vm5243_vm6, %v3941_v1, %v285_v52 }
 0x127   : > { %1031 = vmatpush1.msra.mxu0 %v314_v55  ;;  %3176 = vmatprep.subr.mxu1 %v5255_v5 }
 0x128   : > { %v287_v56 = vpop.permute.xlu0 %286 }
 0x129   : > { %v262_v57 = vpop.permute.xlu1 %261  ;;  %v292_v58 = vsel %vm5243_vm6, %v285_v52, %v287_v56  ;;  %v291_v59 = vsel %vm5243_vm6, %v287_v56, %v3943_v2  ;;  %vm1323_vm6 = vcmp.lt.s32.totalorder %v3535_v7, 17 }
 0x12a   : > { %1032 = vmatprep.subr.mxu0 %v292_v58  ;;  %3177 = vmatpush3.msra.mxu1 %v291_v59  ;;  %v272_v10 = vsel %vm5244_vm5, %v3965_v28, %v262_v57 }
 0x12b   : > { %1033 = vmatpush1.msra.mxu0 %v293_v60  ;;  %3178 = vmatprep.subr.mxu1 %v5255_v5 }
 0x12c   : > { %v264_v61 = vpop.permute.xlu0 %263 }
 0x12d   : > { %v1316_v62 = vpop.permute.xlu1 %1315  ;;  %v271_v63 = vsel %vm5244_vm5, %v262_v57, %v264_v61  ;;  %v270_v8 = vsel %vm5244_vm5, %v264_v61, %v3977_v31  ;;  %vm1302_vm5 = vcmp.lt.s32.totalorder %v3535_v7, 18 }
 0x12e   : > { %1034 = vmatprep.subr.mxu0 %v271_v63  ;;  %3179 = vmatpush3.msra.mxu1 %v270_v8 }
 0x12f   : > { %1035 = vmatpush1.msra.mxu0 %v272_v10  ;;  %3181 = vmatmul.mubr.msk.f32.vlgmr.msra.gmra.mxu1 %vm714_vm8, %v3982_v32 }
 0x130   : > { %v1318_v11 = vpop.permute.xlu0 %1317  ;;  %3062 = vmatmul.mubr.msk.f32.vlgmr.msra.gmra.mxu0 %vm714_vm8, %v3982_v32  ;;  %1519 = vmatprep.mubr.f32.mxu1 %v5255_v5 }
 0x131   : > { %v4064_v12 = vpop.permute.xlu1 %1313  ;;  %v1326_v13 = vsel %vm1323_vm6, %v1316_v62, %v1318_v11  ;;  %1448 = vmatprep.mubr.f32.mxu0 %v5255_v5 }
 0x132   : > { %1398 = vmatprep.subr.mxu0 %v1326_v13  ;;  %v1327_v14 = vsel %vm1323_vm6, %v4064_v12, %v1316_v62 }
 0x133   : > { %1399 = vmatpush1.msra.mxu0 %v1327_v14  ;;  %v3064_v14 = vld [vmem:[%s5216_s2 + $0x10] sm:$0xff] }
 0x134   : > { %v1295_v9 = vpop.permute.xlu0 %1294 }
 0x135   : > { %v1297_v16 = vpop.permute.xlu1 %1296 }
 0x136   : > { %v1305_v17 = vsel %vm1302_vm5, %v1295_v9, %v1297_v16 }
 0x137   : > { %1400 = vmatprep.subr.mxu0 %v1305_v17 }
 0x138   : > { %v4075_v18 = vpop.permute.xlu0 %1292 }
 0x139   : > { %v1274_v19 = vpop.permute.xlu1 %1273  ;;  %v1306_v0 = vsel %vm1302_vm5, %v4075_v18, %v1295_v9 }
 0x13a   : > { %1401 = vmatpush1.msra.mxu0 %v1306_v0 }
 0x13c   : > { %v1276_v20 = vpop.permute.xlu0 %1275 }
 0x13d   : > { %v4081_v1 = vpop.permute.xlu1 %1271  ;;  %v1284_v2 = vsel %vm1281_vm7, %v1274_v19, %v1276_v20 }
 0x13e   : > { %1402 = vmatprep.subr.mxu0 %v1284_v2  ;;  %v1285_v15 = vsel %vm1281_vm7, %v4081_v1, %v1274_v19 }
 0x13f   : > { %1403 = vmatpush1.msra.mxu0 %v1285_v15 }
 0x140   : > { %v1253_v21 = vpop.permute.xlu0 %1252 }
 0x141   : > { %v1255_v22 = vpop.permute.xlu1 %1254 }
 0x142   : > { %v1263_v23 = vsel %vm1260_vm15, %v1253_v21, %v1255_v22 }
 0x143   : > { %1404 = vmatprep.subr.mxu0 %v1263_v23 }
 0x144   : > { %v4091_v24 = vpop.permute.xlu0 %1250 }
 0x145   : > { %v1320_v25 = vpop.permute.xlu1 %1319  ;;  %v1264_v26 = vsel %vm1260_vm15, %v4091_v24, %v1253_v21 }
 0x146   : > { %1405 = vmatpush1.msra.mxu0 %v1264_v26  ;;  %v1325_v30 = vsel %vm1323_vm6, %v1318_v11, %v1320_v25 }
 0x148   : > { %v4096_v27 = vpop.permute.xlu0 %1321 }
 0x149   : > { %v1232_v28 = vpop.permute.xlu1 %1231  ;;  %v1324_v29 = vsel %vm1323_vm6, %v1320_v25, %v4096_v27  ;;  %v1328_v17 = vsel %vm1323_vm6, %v4096_v27, %v4064_v12 }
 0x14a   : > { %1469 = vmatprep.subr.mxu1 %v1324_v29 }
 0x14b   : > { %1470 = vmatpush1.msra.mxu1 %v1325_v30 }
 0x14c   : > { %v1234_v31 = vpop.permute.xlu0 %1233 }
 0x14d   : > { %v4104_v32 = vpop.permute.xlu1 %1229  ;;  %v1242_v3 = vsel %vm1239_vm14, %v1232_v28, %v1234_v31 }
 0x14e   : > { %1406 = vmatprep.subr.mxu0 %v1242_v3  ;;  %v1243_v33 = vsel %vm1239_vm14, %v4104_v32, %v1232_v28 }
 0x14f   : > { %1407 = vmatpush1.msra.mxu0 %v1243_v33 }
 0x150   : > { %v1299_v4 = vpop.permute.xlu0 %1298 }
 0x151   : > { %v4111_v34 = vpop.permute.xlu1 %1300  ;;  %v1304_v35 = vsel %vm1302_vm5, %v1297_v16, %v1299_v4 }
 0x152   : > { %v1303_v37 = vsel %vm1302_vm5, %v1299_v4, %v4111_v34  ;;  %v1307_v2 = vsel %vm1302_vm5, %v4111_v34, %v4075_v18 }
 0x153   : > { %1471 = vmatprep.subr.mxu1 %v1303_v37 }
 0x154   : > { %1472 = vmatpush1.msra.mxu1 %v1304_v35  ;;  %v1211_v38 = vpop.permute.xlu0 %1210 }
 0x155   : > { %v1213_v36 = vpop.permute.xlu1 %1212 }
 0x156   : > { %v1221_v39 = vsel %vm1218_vm13, %v1211_v38, %v1213_v36 }
 0x157   : > { %1408 = vmatprep.subr.mxu0 %v1221_v39 }
 0x158   : > { %v4121_v41 = vpop.permute.xlu0 %1208 }
 0x159   : > { %v1278_v42 = vpop.permute.xlu1 %1277  ;;  %v1222_v40 = vsel %vm1218_vm13, %v4121_v41, %v1211_v38 }
 0x15a   : > { %1409 = vmatpush1.msra.mxu0 %v1222_v40  ;;  %v1283_v46 = vsel %vm1281_vm7, %v1276_v20, %v1278_v42 }
 0x15c   : > { %v1280_v43 = vpop.permute.xlu0 %1279 }
 0x15d   : > { %v1190_v44 = vpop.permute.xlu1 %1189  ;;  %v1282_v45 = vsel %vm1281_vm7, %v1278_v42, %v1280_v43  ;;  %v1286_v15 = vsel %vm1281_vm7, %v1280_v43, %v4081_v1 }
 0x15e   : > { %1473 = vmatprep.subr.mxu1 %v1282_v45 }
 0x15f   : > { %1474 = vmatpush1.msra.mxu1 %v1283_v46 }
 0x160   : > { %v1192_v47 = vpop.permute.xlu0 %1191 }
 0x161   : > { %v4131_v48 = vpop.permute.xlu1 %1187  ;;  %v1200_v49 = vsel %vm5254_vm12, %v1190_v44, %v1192_v47 }
 0x162   : > { %1410 = vmatprep.subr.mxu0 %v1200_v49  ;;  %v1201_v50 = vsel %vm5254_vm12, %v4131_v48, %v1190_v44 }
 0x163   : > { %1411 = vmatpush1.msra.mxu0 %v1201_v50 }
 0x164   : > { %v1257_v51 = vpop.permute.xlu0 %1256 }
 0x165   : > { %v1259_v52 = vpop.permute.xlu1 %1258  ;;  %v1262_v53 = vsel %vm1260_vm15, %v1255_v22, %v1257_v51 }
 0x166   : > { %v1261_v54 = vsel %vm1260_vm15, %v1257_v51, %v1259_v52  ;;  %v1265_v18 = vsel %vm1260_vm15, %v1259_v52, %v4091_v24 }
 0x167   : > { %1475 = vmatprep.subr.mxu1 %v1261_v54 }
 0x168   : > { %1476 = vmatpush1.msra.mxu1 %v1262_v53  ;;  %v1169_v55 = vpop.permute.xlu0 %1168 }
 0x169   : > { %v1171_v56 = vpop.permute.xlu1 %1170 }
 0x16a   : > { %v1179_v57 = vsel %vm5253_vm11, %v1169_v55, %v1171_v56 }
 0x16b   : > { %1412 = vmatprep.subr.mxu0 %v1179_v57 }
 0x16c   : > { %v4145_v58 = vpop.permute.xlu0 %1166 }
 0x16d   : > { %v1236_v59 = vpop.permute.xlu1 %1235  ;;  %v1180_v60 = vsel %vm5253_vm11, %v4145_v58, %v1169_v55 }
 0x16e   : > { %1413 = vmatpush1.msra.mxu0 %v1180_v60  ;;  %v1241_v8 = vsel %vm1239_vm14, %v1234_v31, %v1236_v59 }
 0x170   : > { %v1238_v61 = vpop.permute.xlu0 %1237 }
 0x171   : > { %v1148_v62 = vpop.permute.xlu1 %1147  ;;  %v1240_v63 = vsel %vm1239_vm14, %v1236_v59, %v1238_v61  ;;  %v1244_v1 = vsel %vm1239_vm14, %v1238_v61, %v4104_v32 }
 0x172   : > { %1477 = vmatprep.subr.mxu1 %v1240_v63 }
 0x173   : > { %1478 = vmatpush1.msra.mxu1 %v1241_v8 }
 0x174   : > { %v1150_v10 = vpop.permute.xlu0 %1149 }
 0x175   : > { %v1146_v11 = vpop.permute.xlu1 %1145  ;;  %v1158_v13 = vsel %vm5252_vm10, %v1148_v62, %v1150_v10 }
 0x176   : > { %1414 = vmatprep.subr.mxu0 %v1158_v13  ;;  %v1159_v9 = vsel %vm5252_vm10, %v1146_v11, %v1148_v62 }
 0x177   : > { %1415 = vmatpush1.msra.mxu0 %v1159_v9 }
 0x178   : > { %v1215_v16 = vpop.permute.xlu0 %1214  ;;  %3065 = vmatmul.mubr.msk.f32.vlgmr.msra.gmra.mxu0 %vm714_vm8, %v3064_v14  ;;  %3183 = vmatprep.subr.mxu0 %v5255_v5 }
 0x179   : > { %v1217_v19 = vpop.permute.xlu1 %1216  ;;  %3184 = vmatpush3.msra.mxu0 %v1328_v17  ;;  %v1220_v0 = vsel %vm1218_vm13, %v1213_v36, %v1215_v16  ;;  %3201 = vmatprep.mubr.msk.f32.mxu0 %vm3339_vm9, %v5255_v5  ;;  %v1630_v36 = vshrl.u32 %v267_v6, 7 }
 0x17a   : > { %v1219_v20 = vsel %vm1218_vm13, %v1215_v16, %v1217_v19  ;;  %3185 = vmatprep.subr.mxu0 %v5255_v5  ;;  %v1223_v24 = vsel %vm1218_vm13, %v1217_v19, %v4121_v41  ;;  %v1627_v41 = vld [vmem:[%s5215_s1] sm:$0x1f] }
 0x17b   : > { %1479 = vmatprep.subr.mxu1 %v1219_v20  ;;  %3186 = vmatpush3.msra.mxu0 %v1307_v2  ;;  %v1635_v39 = vsub.s32 1, %v1630_v36  ;;  %v1643_v40 = vsub.s32 3, %v1630_v36  ;;  %v1647_v43 = vsub.s32 4, %v1630_v36 }
 0x17c   : > { %1480 = vmatpush1.msra.mxu1 %v1220_v0  ;;  %v1194_v12 = vpop.permute.xlu0 %1193  ;;  %3187 = vmatprep.subr.mxu0 %v5255_v5  ;;  %v1639_v0 = vsub.s32 2, %v1630_v36 }
 0x17d   : > { %v1196_v21 = vpop.permute.xlu1 %1195  ;;  %3188 = vmatpush3.msra.mxu0 %v1286_v15  ;;  %v1199_v22 = vsel %vm5254_vm12, %v1192_v47, %v1194_v12  ;;  %v1636_v42 = vrot.slane %v1627_v41, %v1635_v39  ;;  %v1644_v44 = vrot.slane %v1627_v41, %v1643_v40  ;;  %v1648_v45 = vrot.slane %v1627_v41, %v1647_v43 }
 0x17e   : > { %v1198_v23 = vsel %vm5254_vm12, %v1194_v12, %v1196_v21  ;;  %3189 = vmatprep.subr.mxu0 %v5255_v5  ;;  %v1202_v30 = vsel %vm5254_vm12, %v1196_v21, %v4131_v48 }
 0x17f   : > { %1481 = vmatprep.subr.mxu1 %v1198_v23  ;;  %3190 = vmatpush3.msra.mxu0 %v1265_v18 }
 0x180   : > { %1482 = vmatpush1.msra.mxu1 %v1199_v22  ;;  %v1173_v25 = vpop.permute.xlu0 %1172  ;;  %3191 = vmatprep.subr.mxu0 %v5255_v5 }
 0x181   : > { %v1175_v26 = vpop.permute.xlu1 %1174  ;;  %3192 = vmatpush3.msra.mxu0 %v1244_v1  ;;  %v1178_v27 = vsel %vm5253_vm11, %v1171_v56, %v1173_v25  ;;  %v1631_v56 = vsub.s32 0, %v1630_v36 }
 0x182   : > { %v1177_v28 = vsel %vm5253_vm11, %v1173_v25, %v1175_v26  ;;  %3193 = vmatprep.subr.mxu0 %v5255_v5  ;;  %v1181_v33 = vsel %vm5253_vm11, %v1175_v26, %v4145_v58  ;;  %v1640_v25 = vrot.slane %v1627_v41, %v1639_v0 }
 0x183   : > { %1483 = vmatprep.subr.mxu1 %v1177_v28  ;;  %3194 = vmatpush3.msra.mxu0 %v1223_v24  ;;  %v1632_v62 = vrot.slane %v1627_v41, %v1631_v56 }
 0x184   : > { %1484 = vmatpush1.msra.mxu1 %v1178_v27  ;;  %v1152_v29 = vpop.permute.xlu0 %1151  ;;  %3195 = vmatprep.subr.mxu0 %v5255_v5  ;;  %v784_v34 = vpop.f32.mrf.mxu0 }
 0x185   : > { %v1154_v31 = vpop.permute.xlu1 %1153  ;;  %3196 = vmatpush3.msra.mxu0 %v1202_v30  ;;  %v1157_v32 = vsel %vm5252_vm10, %v1150_v10, %v1152_v29 }
 0x186   : > { %v1156_v3 = vsel %vm5252_vm10, %v1152_v29, %v1154_v31  ;;  %3197 = vmatprep.subr.mxu0 %v5255_v5  ;;  %v1160_v4 = vsel %vm5252_vm10, %v1154_v31, %v1146_v11  ;;  %v786_v35 = vpop.f32.mrf.mxu0 }
 0x187   : > { %1485 = vmatprep.subr.mxu1 %v1156_v3  ;;  %3198 = vmatpush3.msra.mxu0 %v1181_v33 }
 0x188   : > { %1486 = vmatpush1.msra.mxu1 %v1157_v32  ;;  %3199 = vmatprep.subr.mxu0 %v5255_v5 }
 0x189   : > { %3066 = vmatmul.mubr.msk.f32.vlgmr.msra.gmra.mxu1 %vm714_vm8, %v3064_v14  ;;  %3200 = vmatpush3.msra.mxu0 %v1160_v4 }
 0x18a   : > { %3202 = vmatmul.mubr.msk.f32.vlgmr.msra.gmra.mxu0 %vm714_vm8, %v3064_v14  ;;  %2164 = vmatprep.mubr.f32.mxu1 %v5255_v5 }
 0x18b   : > { %2235 = vmatprep.mubr.f32.mxu0 %v5255_v5 }
 0x191   : > { %v1605_v55 = vpop.permute.xlu0 %1604 }
 0x198   : > { %v855_v46 = vpop.f32.mrf.mxu1 }
 0x199   : > { %v926_v37 = vpop.f32.mrf.mxu0 }
 0x19a   : > { %v857_v47 = vpop.f32.mrf.mxu1 }
 0x19b   : > { %v3161_v38 = vpop.f32.mrf.mxu0 }
 0x1d7   : > { %v999_v48 = vpop.f32.mrf.mxu1 }
 0x1d8   : > { %v1000_v54 = vadd.f32 %v999_v48, %v784_v34 }
 0x1d9   : > { %v1001_v49 = vpop.f32.mrf.mxu1 }
 0x1da   : > { %v1002_v57 = vadd.f32 %v1001_v49, %v786_v35 }
 0x1ef   : > { %v1141_v50 = vpop.f32.mrf.mxu1 }
 0x1f0   : > { %v1070_v52 = vpop.f32.mrf.mxu0  ;;  %v1142_v17 = vadd.f32 %v1141_v50, %v926_v37 }
 0x1f1   : > { %v3182_v51 = vpop.f32.mrf.mxu1  ;;  %v1071_v16 = vadd.f32 %v1070_v52, %v855_v46 }
 0x1f2   : > { %v1072_v53 = vpop.f32.mrf.mxu0 }
 0x1f3   : > { %v1073_v20 = vadd.f32 %v1072_v53, %v857_v47 }
 0x238   : > { %v1450_v6 = vpop.f32.mrf.mxu0 }
 0x239   : > { %v1596_v58 = vadd.f32 %v1450_v6, %v1000_v54 }
 0x23a   : > { %v1452_v59 = vpop.f32.mrf.mxu0 }
 0x23b   : > { %v1607_v60 = vadd.f32 %v1605_v55, %v1596_v58  ;;  %v1597_v61 = vadd.f32 %v1452_v59, %v1002_v57 }
 0x23d   : > { %vm1612_vm10 = vcmp.ge.f32.partialorder %v1607_v60, 0.0  ;;  %v1617_v63 = vmul.f32 0.2, %v1607_v60  ;;  %v1608_v8 = vadd.f32 %v1605_v55, %v1597_v61 }
 0x23f   : > { %v1622_v10 = vsel %vm1612_vm10, %v1607_v60, %v1617_v63  ;;  %vm1613_vm11 = vcmp.ge.f32.partialorder %v1608_v8, 0.0  ;;  %v1618_v11 = vmul.f32 0.2, %v1608_v8 }
 0x240   : > { %v4226_v13 = vmul.f32 %v1632_v62, %v1622_v10 }
 0x241   : > { %v1623_v14 = vsel %vm1613_vm11, %v1608_v8, %v1618_v11 }
 0x242   : > { %v4228_v9 = vmul.f32 %v1636_v42, %v1623_v14  ;;  %2030 = vrot.lane.b32.xlu0 %v4226_v13, %s3319_s27 }
 0x249   : > { %v1521_v19 = vpop.f32.mrf.mxu1 }
 0x24a   : > { %v1598_v2 = vadd.f32 %v1521_v19, %v1071_v16  ;;  %v1592_v12 = vpop.f32.mrf.mxu0 }
 0x24b   : > { %v1523_v15 = vpop.f32.mrf.mxu1  ;;  %v1600_v21 = vadd.f32 %v1592_v12, %v1142_v17 }
 0x24c   : > { %v1609_v22 = vadd.f32 %v1605_v55, %v1598_v2  ;;  %v1599_v23 = vadd.f32 %v1523_v15, %v1073_v20  ;;  %v3203_v18 = vpop.f32.mrf.mxu0 }
 0x24d   : > { %v1611_v1 = vadd.f32 %v1605_v55, %v1600_v21 }
 0x24e   : > { %vm1614_vm10 = vcmp.ge.f32.partialorder %v1609_v22, 0.0  ;;  %v1619_v26 = vmul.f32 0.2, %v1609_v22  ;;  %v1610_v27 = vadd.f32 %v1605_v55, %v1599_v23 }
 0x24f   : > { %vm1616_vm11 = vcmp.ge.f32.partialorder %v1611_v1, 0.0  ;;  %v1621_v28 = vmul.f32 0.2, %v1611_v1 }
 0x250   : > { %v1624_v24 = vsel %vm1614_vm10, %v1609_v22, %v1619_v26  ;;  %vm1615_vm12 = vcmp.ge.f32.partialorder %v1610_v27, 0.0  ;;  %v1620_v29 = vmul.f32 0.2, %v1610_v27 }
 0x251   : > { %v4232_v30 = vmul.f32 %v1640_v25, %v1624_v24  ;;  %v1626_v31 = vsel %vm1616_vm11, %v1611_v1, %v1621_v28  ;;  %vm5280_vm11 = vcmp.lt.s32.totalorder %v3535_v7, 10 }
 0x252   : > { %v1625_v32 = vsel %vm1615_vm12, %v1610_v27, %v1620_v29  ;;  %v4234_v3 = vmul.f32 %v1648_v45, %v1626_v31  ;;  %vm5278_vm12 = vcmp.lt.s32.totalorder %v3535_v7, 9 }
 0x253   : > { %v4236_v33 = vmul.f32 %v1644_v44, %v1625_v32  ;;  %2014 = vrot.lane.b32.xlu0 %v4232_v30, %s3320_s28  ;;  %2034 = vrot.lane.b32.xlu1 %v4232_v30, %s3319_s27  ;;  %vm5279_vm10 = vmmov %vm5278_vm12 }
 0x257   : > { %1990 = vrot.lane.b32.xlu0 %v4226_v13, %s3321_s29  ;;  %2010 = vrot.lane.b32.xlu1 %v4226_v13, %s3320_s28 }
 0x25b   : > { %1974 = vrot.lane.b32.xlu0 %v4232_v30, %s3322_s30  ;;  %1994 = vrot.lane.b32.xlu1 %v4232_v30, %s3321_s29 }
 0x25f   : > { %1945 = vrot.lane.b32.xlu0 %v4226_v13, %s3323_s7  ;;  %1970 = vrot.lane.b32.xlu1 %v4226_v13, %s3322_s30 }
 0x263   : > { %1905 = vrot.lane.b32.xlu0 %v4226_v13, %s3326_s9  ;;  %1925 = vrot.lane.b32.xlu1 %v4226_v13, %s3324_s8 }
 0x267   : > { %1949 = vrot.lane.b32.xlu0 %v4232_v30, %s3323_s7  ;;  %1885 = vrot.lane.b32.xlu1 %v4226_v13, %s3327_s10 }
 0x26b   : > { %1929 = vrot.lane.b32.xlu0 %v4232_v30, %s3324_s8  ;;  %1799 = vrot.lane.b32.xlu1 %v4226_v13, %s3329_s12 }
 0x26f   : > { %1909 = vrot.lane.b32.xlu0 %v4232_v30, %s3326_s9  ;;  %1823 = vrot.lane.b32.xlu1 %v4232_v30, %s3328_s11 }
 0x273   : > { %1889 = vrot.lane.b32.xlu0 %v4232_v30, %s3327_s10  ;;  %1759 = vrot.lane.b32.xlu1 %v4226_v13, %s3331_s14 }
 0x277   : > { %1819 = vrot.lane.b32.xlu0 %v4226_v13, %s3328_s11  ;;  %1783 = vrot.lane.b32.xlu1 %v4232_v30, %s3330_s13 }
 0x27b   : > { %1779 = vrot.lane.b32.xlu0 %v4226_v13, %s3330_s13  ;;  %1719 = vrot.lane.b32.xlu1 %v4226_v13, %s3333_s16 }
 0x27f   : > { %1803 = vrot.lane.b32.xlu0 %v4232_v30, %s3329_s12  ;;  %1743 = vrot.lane.b32.xlu1 %v4232_v30, %s3332_s15 }
 0x283   : > { %1739 = vrot.lane.b32.xlu0 %v4226_v13, %s3332_s15  ;;  %1679 = vrot.lane.b32.xlu1 %v4226_v13, %s3335_s18 }
 0x287   : > { %1763 = vrot.lane.b32.xlu0 %v4232_v30, %s3331_s14  ;;  %1703 = vrot.lane.b32.xlu1 %v4232_v30, %s3334_s17 }
 0x28b   : > { %1699 = vrot.lane.b32.xlu0 %v4226_v13, %s3334_s17  ;;  %2032 = vrot.lane.b32.xlu1 %v4228_v9, %s3319_s27 }
 0x28f   : > { %1723 = vrot.lane.b32.xlu0 %v4232_v30, %s3333_s16  ;;  %2012 = vrot.lane.b32.xlu1 %v4228_v9, %s3320_s28 }
 0x293   : > { %1992 = vrot.lane.b32.xlu0 %v4228_v9, %s3321_s29  ;;  %1972 = vrot.lane.b32.xlu1 %v4228_v9, %s3322_s30 }
 0x297   : > { %1927 = vrot.lane.b32.xlu0 %v4228_v9, %s3324_s8  ;;  %1947 = vrot.lane.b32.xlu1 %v4228_v9, %s3323_s7 }
 0x29b   : > { %1887 = vrot.lane.b32.xlu0 %v4228_v9, %s3327_s10  ;;  %1907 = vrot.lane.b32.xlu1 %v4228_v9, %s3326_s9 }
 0x29f   : > { %2016 = vrot.lane.b32.xlu0 %v4236_v33, %s3320_s28  ;;  %2036 = vrot.lane.b32.xlu1 %v4236_v33, %s3319_s27 }
 0x2a3   : > { %1996 = vrot.lane.b32.xlu0 %v4236_v33, %s3321_s29  ;;  %1951 = vrot.lane.b32.xlu1 %v4236_v33, %s3323_s7 }
 0x2a7   : > { %1976 = vrot.lane.b32.xlu0 %v4236_v33, %s3322_s30  ;;  %1931 = vrot.lane.b32.xlu1 %v4236_v33, %s3324_s8 }
 0x2ab   : > { %1801 = vrot.lane.b32.xlu0 %v4228_v9, %s3329_s12  ;;  %1911 = vrot.lane.b32.xlu1 %v4236_v33, %s3326_s9 }
 0x2af   : > { %1825 = vrot.lane.b32.xlu0 %v4236_v33, %s3328_s11  ;;  %1891 = vrot.lane.b32.xlu1 %v4236_v33, %s3327_s10 }
 0x2b3   : > { %1761 = vrot.lane.b32.xlu0 %v4228_v9, %s3331_s14  ;;  %1821 = vrot.lane.b32.xlu1 %v4228_v9, %s3328_s11 }
 0x2b4   : > { %v4350_v4 = vpop.permute.xlu0 %2030 }
 0x2b7   : > { %1785 = vrot.lane.b32.xlu0 %v4236_v33, %s3330_s13  ;;  %1781 = vrot.lane.b32.xlu1 %v4228_v9, %s3330_s13 }
 0x2bb   : > { %1721 = vrot.lane.b32.xlu0 %v4228_v9, %s3333_s16  ;;  %1805 = vrot.lane.b32.xlu1 %v4236_v33, %s3329_s12 }
 0x2bf   : > { %1745 = vrot.lane.b32.xlu0 %v4236_v33, %s3332_s15  ;;  %1741 = vrot.lane.b32.xlu1 %v4228_v9, %s3332_s15 }
 0x2c3   : > { %1681 = vrot.lane.b32.xlu0 %v4228_v9, %s3335_s18  ;;  %1765 = vrot.lane.b32.xlu1 %v4236_v33, %s3331_s14 }
 0x2c5   : > { %v4356_v34 = vpop.permute.xlu0 %2014  ;;  %v4358_v35 = vpop.permute.xlu1 %2034 }
 0x2c7   : > { %1705 = vrot.lane.b32.xlu0 %v4236_v33, %s3334_s17  ;;  %1701 = vrot.lane.b32.xlu1 %v4228_v9, %s3334_s17 }
 0x2c9   : > { %v4364_v37 = vpop.permute.xlu0 %1990  ;;  %v4366_v38 = vpop.permute.xlu1 %2010 }
 0x2cb   : > { %1953 = vrot.lane.b32.xlu0 %v4234_v3, %s3323_s7  ;;  %1725 = vrot.lane.b32.xlu1 %v4236_v33, %s3333_s16  ;;  %s5270_s7 = smov 27  }
 0x2cd   : > { %v4372_v36 = vpop.permute.xlu0 %1974  ;;  %v4374_v39 = vpop.permute.xlu1 %1994 }
 0x2cf   : > { %1913 = vrot.lane.b32.xlu0 %v4234_v3, %s3326_s9  ;;  %1933 = vrot.lane.b32.xlu1 %v4234_v3, %s3324_s8  ;;  %s5271_s8 = smov 28   ;;  %s5272_s9 = smov 29  }
 0x2d1   : > { %v4380_v41 = vpop.permute.xlu0 %1945  ;;  %v4382_v42 = vpop.permute.xlu1 %1970 }
 0x2d3   : > { %2038 = vrot.lane.b32.xlu0 %v4234_v3, %s3319_s27  ;;  %1893 = vrot.lane.b32.xlu1 %v4234_v3, %s3327_s10  ;;  %s5263_s27 = smov 111   ;;  %s5273_s10 = smov 37  }
 0x2d5   : > { %v4388_v40 = vpop.permute.xlu0 %1905  ;;  %v4390_v43 = vpop.permute.xlu1 %1925 }
 0x2d7   : > { %1827 = vrot.lane.b32.xlu0 %v4234_v3, %s3328_s11  ;;  %2018 = vrot.lane.b32.xlu1 %v4234_v3, %s3320_s28  ;;  %s5265_s28 = smov 17   ;;  %s5274_s11 = smov 38  }
 0x2d9   : > { %v4396_v44 = vpop.permute.xlu0 %1949  ;;  %v4398_v45 = vpop.permute.xlu1 %1885 }
 0x2db   : > { %1787 = vrot.lane.b32.xlu0 %v4234_v3, %s3330_s13  ;;  %1998 = vrot.lane.b32.xlu1 %v4234_v3, %s3321_s29  ;;  %s5267_s29 = smov 18  }
 0x2dd   : > { %v4404_v46 = vpop.permute.xlu0 %1929  ;;  %v4406_v47 = vpop.permute.xlu1 %1799 }
 0x2df   : > { %1747 = vrot.lane.b32.xlu0 %v4234_v3, %s3332_s15  ;;  %1978 = vrot.lane.b32.xlu1 %v4234_v3, %s3322_s30  ;;  %s5269_s30 = smov 19  }
 0x2e1   : > { %v4412_v48 = vpop.permute.xlu0 %1909  ;;  %v4414_v49 = vpop.permute.xlu1 %1823 }
 0x2e3   : > { %1707 = vrot.lane.b32.xlu0 %v4234_v3, %s3334_s17  ;;  %1807 = vrot.lane.b32.xlu1 %v4234_v3, %s3329_s12 }
 0x2e5   : > { %v4420_v50 = vpop.permute.xlu0 %1889  ;;  %v4422_v51 = vpop.permute.xlu1 %1759 }
 0x2e7   : > { %1659 = vrot.lane.b32.xlu0 %v4226_v13, %s5263_s27  ;;  %1767 = vrot.lane.b32.xlu1 %v4234_v3, %s3331_s14 }
 0x2e9   : > { %v4428_v52 = vpop.permute.xlu0 %1819  ;;  %v4430_v53 = vpop.permute.xlu1 %1783 }
 0x2eb   : > { %1683 = vrot.lane.b32.xlu0 %v4232_v30, %s3335_s18  ;;  %1727 = vrot.lane.b32.xlu1 %v4234_v3, %s3333_s16 }
 0x2ed   : > { %v4436_v54 = vpop.permute.xlu0 %1779  ;;  %v4438_v6 = vpop.permute.xlu1 %1719 }
 0x2ef   : > { %1667 = vrot.lane.b32.xlu0 %v4234_v3, %s5263_s27  ;;  %1687 = vrot.lane.b32.xlu1 %v4234_v3, %s3335_s18 }
 0x2f1   : > { %v4444_v55 = vpop.permute.xlu0 %1803  ;;  %v4446_v56 = vpop.permute.xlu1 %1743 }
 0x2f3   : > { %1665 = vrot.lane.b32.xlu0 %v4236_v33, %s5263_s27  ;;  %1661 = vrot.lane.b32.xlu1 %v4228_v9, %s5263_s27 }
 0x2f5   : > { %v4452_v57 = vpop.permute.xlu0 %1739  ;;  %v4454_v58 = vpop.permute.xlu1 %1679 }
 0x2f6   : > { %5264 = vst [vmem:[#allocation3_spill] sm:$0xff] %v4454_v58 }
 0x2f7   : > { %2691 = vrot.lane.b32.xlu0 %v4232_v30, %s5265_s28  ;;  %1685 = vrot.lane.b32.xlu1 %v4236_v33, %s3335_s18 }
 0x2f9   : > { %v4460_v59 = vpop.permute.xlu0 %1763  ;;  %v4462_v60 = vpop.permute.xlu1 %1703 }
 0x2fa   : > { %5266 = vst [vmem:[#allocation4_spill] sm:$0xff] %v4462_v60 }
 0x2fb   : > { %2669 = vrot.lane.b32.xlu0 %v4228_v9, %s5267_s29  ;;  %1663 = vrot.lane.b32.xlu1 %v4232_v30, %s5263_s27 }
 0x2fd   : > { %v4468_v61 = vpop.permute.xlu0 %1699  ;;  %v2033_v62 = vpop.permute.xlu1 %2032 }
 0x2fe   : > { %5268 = vst [vmem:[#allocation5_spill] sm:$0xff] %v4468_v61  ;;  %v2042_v63 = vsel %vm656_vm0, %v2033_v62, %v4358_v35  ;;  %v2043_v8 = vsel %vm656_vm0, %v4350_v4, %v2033_v62 }
 0x2ff   : > { %2114 = vmatprep.subr.mxu1 %v2042_v63  ;;  %2667 = vrot.lane.b32.xlu0 %v4226_v13, %s5267_s29 }
 0x300   : > { %2689 = vrot.lane.b32.xlu1 %v4228_v9, %s5265_s28  ;;  %2115 = vmatpush1.msra.mxu1 %v2043_v8 }
 0x301   : > { %v4480_v10 = vpop.permute.xlu0 %1723  ;;  %v2013_v11 = vpop.permute.xlu1 %2012 }
 0x302   : > { %v2022_v14 = vsel %vm635_vm1, %v2013_v11, %v4356_v34  ;;  %v2023_v16 = vsel %vm635_vm1, %v4366_v38, %v2013_v11 }
 0x303   : > { %2116 = vmatprep.subr.mxu1 %v2022_v14  ;;  %2651 = vrot.lane.b32.xlu0 %v4232_v30, %s5269_s30 }
 0x304   : > { %2687 = vrot.lane.b32.xlu1 %v4226_v13, %s5265_s28  ;;  %2117 = vmatpush1.msra.mxu1 %v2023_v16 }
 0x305   : > { %v1993_v17 = vpop.permute.xlu0 %1992  ;;  %v1973_v19 = vpop.permute.xlu1 %1972 }
 0x306   : > { %v2003_v0 = vsel %vm614_vm2, %v4364_v37, %v1993_v17  ;;  %v2002_v20 = vsel %vm614_vm2, %v1993_v17, %v4374_v39  ;;  %v1982_v2 = vsel %vm593_vm3, %v1973_v19, %v4372_v36  ;;  %v1983_v21 = vsel %vm593_vm3, %v4382_v42, %v1973_v19 }
 0x307   : > { %2118 = vmatprep.subr.mxu1 %v2002_v20  ;;  %2629 = vrot.lane.b32.xlu0 %v4228_v9, %s5270_s7 }
 0x308   : > { %2671 = vrot.lane.b32.xlu1 %v4232_v30, %s5267_s29  ;;  %2119 = vmatpush1.msra.mxu1 %v2003_v0 }
 0x309   : > { %v4505_v12 = vpop.permute.xlu0 %1927  ;;  %2120 = vmatprep.subr.mxu1 %v1982_v2  ;;  %v4507_v15 = vpop.permute.xlu1 %1947 }
 0x30a   : > { %2121 = vmatpush1.msra.mxu1 %v1983_v21  ;;  %v1958_v22 = vsel %vm567_vm4, %v4380_v41, %v4507_v15 }
 0x30b   : > { %2122 = vmatprep.subr.mxu1 %v4228_v9  ;;  %2627 = vrot.lane.b32.xlu0 %v4226_v13, %s5270_s7 }
 0x30c   : > { %2649 = vrot.lane.b32.xlu1 %v4228_v9, %s5269_s30  ;;  %2123 = vmatpush1.msra.mxu1 %v4226_v13 }
 0x30d   : > { %v4522_v23 = vpop.permute.xlu0 %1887  ;;  %2124 = vmatprep.subr.mxu1 %v1958_v22  ;;  %v4524_v18 = vpop.permute.xlu1 %1907 }
 0x30f   : > { %2611 = vrot.lane.b32.xlu0 %v4232_v30, %s5271_s8 }
 0x310   : > { %2647 = vrot.lane.b32.xlu1 %v4226_v13, %s5269_s30 }
 0x311   : > { %v4530_v25 = vpop.permute.xlu0 %2016  ;;  %v4532_v1 = vpop.permute.xlu1 %2036 }
 0x313   : > { %2589 = vrot.lane.b32.xlu0 %v4228_v9, %s5272_s9 }
 0x314   : > { %2631 = vrot.lane.b32.xlu1 %v4232_v30, %s5270_s7 }
 0x315   : > { %v4538_v26 = vpop.permute.xlu0 %1996  ;;  %v4540_v27 = vpop.permute.xlu1 %1951 }
 0x317   : > { %2587 = vrot.lane.b32.xlu0 %v4226_v13, %s5272_s9 }
 0x318   : > { %2609 = vrot.lane.b32.xlu1 %v4228_v9, %s5271_s8 }
 0x319   : > { %v4546_v28 = vpop.permute.xlu0 %1976  ;;  %v4548_v24 = vpop.permute.xlu1 %1931 }
 0x31b   : > { %2571 = vrot.lane.b32.xlu0 %v4232_v30, %s5273_s10 }
 0x31c   : > { %2607 = vrot.lane.b32.xlu1 %v4226_v13, %s5271_s8 }
 0x31d   : > { %v4554_v29 = vpop.permute.xlu0 %1801  ;;  %v4556_v31 = vpop.permute.xlu1 %1911 }
 0x31f   : > { %2549 = vrot.lane.b32.xlu0 %v4228_v9, %s5274_s11 }
 0x320   : > { %2591 = vrot.lane.b32.xlu1 %v4232_v30, %s5272_s9 }
 0x321   : > { %v4562_v32 = vpop.permute.xlu0 %1825  ;;  %v4564_v62 = vpop.permute.xlu1 %1891 }
 0x323   : > { %2547 = vrot.lane.b32.xlu0 %v4226_v13, %s5274_s11 }
 0x324   : > { %2569 = vrot.lane.b32.xlu1 %v4228_v9, %s5273_s10 }
 0x325   : > { %v4570_v63 = vpop.permute.xlu0 %1761  ;;  %v4572_v8 = vpop.permute.xlu1 %1821 }
 0x327   : > { %2531 = vrot.lane.b32.xlu0 %v4232_v30, %s3346_s25 }
 0x328   : > { %2567 = vrot.lane.b32.xlu1 %v4226_v13, %s5273_s10 }
 0x329   : > { %v4578_v11 = vpop.permute.xlu0 %1785  ;;  %v4580_v14 = vpop.permute.xlu1 %1781 }
 0x32b   : > { %2695 = vrot.lane.b32.xlu0 %v4234_v3, %s5265_s28 }
 0x32c   : > { %2551 = vrot.lane.b32.xlu1 %v4232_v30, %s5274_s11 }
 0x32d   : > { %v4586_v16 = vpop.permute.xlu0 %1721  ;;  %v4588_v17 = vpop.permute.xlu1 %1805 }
 0x32f   : > { %2673 = vrot.lane.b32.xlu0 %v4236_v33, %s5267_s29 }
 0x330   : > { %2529 = vrot.lane.b32.xlu1 %v4228_v9, %s3346_s25 }
 0x331   : > { %v4594_v19 = vpop.permute.xlu0 %1745  ;;  %v4596_v0 = vpop.permute.xlu1 %1741 }
 0x333   : > { %2653 = vrot.lane.b32.xlu0 %v4236_v33, %s5269_s30 }
 0x334   : > { %2693 = vrot.lane.b32.xlu1 %v4236_v33, %s5265_s28 }
 0x335   : > { %v4602_v20 = vpop.permute.xlu0 %1681  ;;  %v4604_v2 = vpop.permute.xlu1 %1765 }
 0x336   : > { %5275 = vst [vmem:[#allocation6_spill] sm:$0xff] %v4602_v20 }
 0x337   : > { %2633 = vrot.lane.b32.xlu0 %v4236_v33, %s5270_s7 }
 0x338   : > { %2527 = vrot.lane.b32.xlu1 %v4226_v13, %s3346_s25  ;;  %v1938_v13 = vsel %vm5278_vm12, %v4390_v43, %v4505_v12  ;;  %vm5281_vm12 = vmmov %vm5280_vm11 }
 0x339   : > { %v4610_v9 = vpop.permute.xlu0 %1705  ;;  %v4612_v21 = vpop.permute.xlu1 %1701 }
 0x33a   : > { %5276 = vst [vmem:[#allocation7_spill] sm:$0xff] %v4610_v9  ;;  %5277 = vst [vmem:[#allocation8_spill] sm:$0xff] %v4612_v21 }
 0x33b   : > { %2613 = vrot.lane.b32.xlu0 %v4236_v33, %s5271_s8 }
 0x33c   : > { %2675 = vrot.lane.b32.xlu1 %v4234_v3, %s5267_s29 }
 0x33d   : > { %v4618_v22 = vpop.permute.xlu0 %1953  ;;  %v4620_v5 = vpop.permute.xlu1 %1725 }
 0x33e   : > { %v1959_v58 = vsel %vm567_vm4, %v4618_v22, %v4380_v41 }
 0x33f   : > { %2593 = vrot.lane.b32.xlu0 %v4236_v33, %s5272_s9  ;;  %2125 = vmatpush1.msra.mxu1 %v1959_v58  ;;  %v1918_v58 = vsel %vm5280_vm11, %v4388_v40, %v4524_v18 }
 0x340   : > { %2655 = vrot.lane.b32.xlu1 %v4234_v3, %s5269_s30  ;;  %2126 = vmatprep.subr.mxu1 %v1938_v13 }
 0x341   : > { %v4634_v20 = vpop.permute.xlu0 %1913  ;;  %v4636_v61 = vpop.permute.xlu1 %1933 }
 0x342   : > { %v1939_v41 = vsel %vm5279_vm10, %v4636_v61, %v4390_v43  ;;  %v1919_v13 = vsel %vm5281_vm12, %v4634_v20, %v4388_v40  ;;  %vm5282_vm10 = vcmp.lt.s32.totalorder %v3535_v7, 11 }
 0x343   : > { %2573 = vrot.lane.b32.xlu0 %v4236_v33, %s5273_s10  ;;  %2127 = vmatpush1.msra.mxu1 %v1939_v41  ;;  %v1898_v41 = vsel %vm5282_vm10, %v4398_v45, %v4522_v23  ;;  %vm5283_vm11 = vmmov %vm5282_vm10 }
 0x344   : > { %2635 = vrot.lane.b32.xlu1 %v4234_v3, %s5270_s7  ;;  %2128 = vmatprep.subr.mxu1 %v1918_v58  ;;  %v4672_v58 = vld [vmem:[%s5218_s4 + $0x8] sm:$0xff] }
 0x345   : > { %v2039_v21 = vpop.permute.xlu0 %2038  ;;  %2129 = vmatpush1.msra.mxu1 %v1919_v13  ;;  %v4654_v43 = vpop.permute.xlu1 %1893  ;;  %v2041_v13 = vsel %vm656_vm0, %v4358_v35, %v4532_v1 }
 0x346   : > { %v1899_v60 = vsel %vm5283_vm11, %v4654_v43, %v4398_v45  ;;  %2130 = vmatprep.subr.mxu1 %v1898_v41  ;;  %v2040_v40 = vsel %vm656_vm0, %v4532_v1, %v2039_v21  ;;  %v5284_v45 = vmov 0.0   ;;  %v2044_v9 = vsel %vm656_vm0, %v2039_v21, %v4350_v4  ;;  %v2974_v4 = vld [vmem:[%s5219_s5] sm:$0xff]  ;;  %vm5291_vm11 = vmmov %vm5282_vm10 }
 0x347   : > { %2553 = vrot.lane.b32.xlu0 %v4236_v33, %s5274_s11  ;;  %2131 = vmatpush1.msra.mxu1 %v1899_v60  ;;  %vm5285_vm0 = vcmp.lt.s32.totalorder %v3535_v7, 9 }
 0x348   : > { %2615 = vrot.lane.b32.xlu1 %v4234_v3, %s5271_s8  ;;  %2185 = vmatprep.subr.mxu0 %v2040_v40 }
 0x349   : > { %2186 = vmatpush1.msra.mxu0 %v2041_v13  ;;  %3204 = vmatprep.subr.mxu1 %v5284_v45  ;;  %v4681_v41 = vpop.permute.xlu0 %1827  ;;  %v2019_v60 = vpop.permute.xlu1 %2018 }
 0x34a   : > { %3069 = vmatmul.mubr.msk.f32.vlgmr.msra.gmra.mxu1 %vm714_vm8, %v4672_v58  ;;  %v2024_v35 = vsel %vm635_vm1, %v2019_v60, %v4366_v38  ;;  %v2020_v1 = vsel %vm635_vm1, %v4530_v25, %v2019_v60  ;;  %v2021_v38 = vsel %vm635_vm1, %v4356_v34, %v4530_v25  ;;  %v2001_v34 = vsel %vm614_vm2, %v4374_v39, %v4538_v26  ;;  %vm5286_vm1 = vmmov %vm5285_vm0 }
 0x34b   : > { %3205 = vmatpush3.msra.mxu1 %v2044_v9  ;;  %2533 = vrot.lane.b32.xlu0 %v4236_v33, %s3346_s25  ;;  %v1981_v39 = vsel %vm593_vm3, %v4372_v36, %v4546_v28  ;;  %v1956_v36 = vsel %vm567_vm4, %v4396_v44, %v4540_v27 }
 0x34c   : > { %3206 = vmatprep.subr.mxu1 %v5284_v45  ;;  %2595 = vrot.lane.b32.xlu1 %v4234_v3, %s5272_s9 }
 0x34d   : > { %2187 = vmatprep.subr.mxu0 %v2020_v1  ;;  %3207 = vmatpush3.msra.mxu1 %v2024_v35  ;;  %v4706_v9 = vpop.permute.xlu0 %1787  ;;  %v1999_v21 = vpop.permute.xlu1 %1998  ;;  %v1936_v1 = vsel %vm5285_vm0, %v4404_v46, %v4548_v24 }
 0x34e   : > { %2188 = vmatpush1.msra.mxu0 %v2021_v38  ;;  %v2004_v40 = vsel %vm614_vm2, %v1999_v21, %v4364_v37  ;;  %3208 = vmatprep.subr.mxu1 %v5284_v45  ;;  %v2000_v13 = vsel %vm614_vm2, %v4538_v26, %v1999_v21  ;;  %vm5287_vm2 = vmmov %vm5285_vm0 }
 0x34f   : > { %2977 = vperm.xlu0 %3305, %v2974_v4   ;;  %3209 = vmatpush3.msra.mxu1 %v2004_v40  ;;  %vm5292_vm0 = vmmov %vm5282_vm10 }
 0x350   : > { %2575 = vrot.lane.b32.xlu1 %v4234_v3, %s5273_s10  ;;  %2189 = vmatprep.subr.mxu0 %v2000_v13 }
 0x351   : > { %2190 = vmatpush1.msra.mxu0 %v2001_v34  ;;  %v4721_v25 = vpop.permute.xlu0 %1747  ;;  %v1979_v37 = vpop.permute.xlu1 %1978  ;;  %3210 = vmatprep.subr.mxu1 %v5284_v45 }
 0x352   : > { %v1984_v60 = vsel %vm593_vm3, %v1979_v37, %v4382_v42  ;;  %v1980_v35 = vsel %vm593_vm3, %v4546_v28, %v1979_v37  ;;  %3222 = vmatprep.mubr.msk.f32.mxu1 %vm3339_vm9, %v5284_v45  ;;  %v1957_v28 = vsel %vm567_vm4, %v4507_v15, %v4396_v44  ;;  %v1937_v44 = vsel %vm5286_vm1, %v4505_v12, %v4404_v46  ;;  %vm5288_vm3 = vmmov %vm5281_vm12 }
 0x353   : > { %2191 = vmatprep.subr.mxu0 %v1980_v35  ;;  %3211 = vmatpush3.msra.mxu1 %v1984_v60  ;;  %v1916_v15 = vsel %vm5288_vm3, %v4412_v48, %v4556_v31  ;;  %vm5290_vm12 = vmmov %vm5288_vm3  ;;  %vm5293_vm1 = vcmp.lt.s32.totalorder %v3535_v7, 89  ;;  %v5316_v35 = vld [vmem:[#allocation7_spill] sm:$0xff] }
 0x354   : > { %2555 = vrot.lane.b32.xlu1 %v4234_v3, %s5274_s11  ;;  %2192 = vmatpush1.msra.mxu0 %v1981_v39  ;;  %v5317_v39 = vld [vmem:[#allocation4_spill] sm:$0xff] }
 0x355   : > { %3212 = vmatprep.subr.mxu1 %v5284_v45  ;;  %v4739_v42 = vpop.permute.xlu0 %1707  ;;  %2193 = vmatprep.subr.mxu0 %v4236_v33  ;;  %v4742_v26 = vpop.permute.xlu1 %1807  ;;  %v1955_v33 = vsel %vm567_vm4, %v4540_v27, %v4618_v22  ;;  %vm5289_vm4 = vmmov %vm5288_vm3  ;;  %v1896_v27 = vsel %vm5282_vm10, %v4420_v50, %v4564_v62 }
 0x356   : > { %3213 = vmatpush3.msra.mxu1 %v4234_v3  ;;  %2194 = vmatpush1.msra.mxu0 %v4232_v30  ;;  %v1917_v46 = vsel %vm5289_vm4, %v4524_v18, %v4412_v48  ;;  %v1897_v48 = vsel %vm5291_vm11, %v4522_v23, %v4420_v50  ;;  %v1895_v18 = vsel %vm5292_vm0, %v4564_v62, %v4654_v43  ;;  %vm5295_vm3 = vmmov %vm5293_vm1  ;;  %vm5296_vm4 = vcmp.lt.s32.totalorder %v3535_v7, 90 }
 0x357   : > { %3214 = vmatprep.subr.mxu1 %v5284_v45  ;;  %2195 = vmatprep.subr.mxu0 %v1956_v36  ;;  %v1832_v23 = vsel %vm5295_vm3, %v4428_v52, %v4572_v8  ;;  %v1810_v62 = vsel %vm5296_vm4, %v4444_v55, %v4588_v17  ;;  %vm5298_vm10 = vmmov %vm5293_vm1  ;;  %vm5300_vm0 = vcmp.lt.s32.totalorder %v3535_v7, 91 }
 0x358   : > { %2535 = vrot.lane.b32.xlu1 %v4234_v3, %s3346_s25  ;;  %3215 = vmatpush3.msra.mxu1 %v1955_v33  ;;  %v1935_v3 = vsel %vm5287_vm2, %v4548_v24, %v4636_v61  ;;  %v1915_v61 = vsel %vm5290_vm12, %v4556_v31, %v4634_v20  ;;  %v1830_v31 = vsel %vm5293_vm1, %v4414_v49, %v4562_v32  ;;  %vm5294_vm2 = vmmov %vm5293_vm1  ;;  %v5323_v33 = vld [vmem:[#allocation5_spill] sm:$0xff] }
 0x359   : > { %2196 = vmatpush1.msra.mxu0 %v1957_v28  ;;  %v4761_v30 = vpop.permute.xlu0 %1659  ;;  %v4767_v4 = vpop.permute.xlu1 %1767  ;;  %3216 = vmatprep.subr.mxu1 %v5284_v45  ;;  %v1831_v50 = vsel %vm5294_vm2, %v4572_v8, %v4414_v49  ;;  %vm5297_vm12 = vmmov %vm5296_vm4  ;;  %v1833_v8 = vsel %vm5298_vm10, %v4681_v41, %v4428_v52 }
 0x35a   : > { %2197 = vmatprep.subr.mxu0 %v1936_v1  ;;  %3217 = vmatpush3.msra.mxu1 %v1935_v3  ;;  %v1811_v49 = vsel %vm5297_vm12, %v4554_v29, %v4444_v55  ;;  %vm5299_vm11 = vmmov %vm5296_vm4  ;;  %v1790_v55 = vsel %vm5300_vm0, %v4430_v53, %v4578_v11 }
 0x35b   : > { %2198 = vmatpush1.msra.mxu0 %v1937_v44  ;;  %3218 = vmatprep.subr.mxu1 %v5284_v45  ;;  %v1812_v43 = vsel %vm5299_vm11, %v4406_v47, %v4554_v29  ;;  %vm5301_vm1 = vmmov %vm5300_vm0 }
 0x35c   : > { %2199 = vmatprep.subr.mxu0 %v1916_v15  ;;  %3219 = vmatpush3.msra.mxu1 %v1915_v61  ;;  %v1791_v52 = vsel %vm5301_vm1, %v4580_v14, %v4430_v53  ;;  %vm5302_vm2 = vmmov %vm5296_vm4  ;;  %vm5304_vm4 = vcmp.lt.s32.totalorder %v3535_v7, 99 }
 0x35d   : > { %2200 = vmatpush1.msra.mxu0 %v1917_v46  ;;  %v4791_v12 = vpop.permute.xlu0 %1683  ;;  %v4797_v24 = vpop.permute.xlu1 %1727  ;;  %3220 = vmatprep.subr.mxu1 %v5284_v45  ;;  %vm5303_vm3 = vmmov %vm5300_vm0  ;;  %v1770_v38 = vsel %vm5304_vm4, %v4460_v59, %v4604_v2  ;;  %v5326_v46 = vld [vmem:[#allocation6_spill] sm:$0xff] }
 0x35e   : > { %2201 = vmatprep.subr.mxu0 %v1896_v27  ;;  %3221 = vmatpush3.msra.mxu1 %v1895_v18  ;;  %v1792_v29 = vsel %vm5303_vm3, %v4436_v54, %v4580_v14  ;;  %vm5305_vm12 = vmmov %vm5304_vm4 }
 0x35f   : > { %2202 = vmatpush1.msra.mxu0 %v1897_v48  ;;  %2400 = vmatprep.subr.mxu1 %v1830_v31  ;;  %vm5306_vm10 = vmmov %vm5300_vm0  ;;  %vm5308_vm0 = vcmp.lt.s32.totalorder %v3535_v7, 100  ;;  %v5330_v48 = vld [vmem:[#allocation3_spill] sm:$0xff] }
 0x360   : > { %3223 = vmatmul.mubr.msk.f32.vlgmr.msra.gmra.mxu1 %vm714_vm8, %v4672_v58  ;;  %2329 = vmatprep.subr.mxu0 %v1832_v23  ;;  %v1793_v40 = vsel %vm5306_vm10, %v4706_v9, %v4436_v54  ;;  %vm5307_vm11 = vmmov %vm5304_vm4  ;;  %v1750_v13 = vsel %vm5308_vm0, %v4446_v56, %v4594_v19  ;;  %v1839_v23 = vld [vmem:[%s5218_s4] sm:$0xff] }
 0x361   : > { %2401 = vmatpush1.msra.mxu1 %v1831_v50  ;;  %v4826_v20 = vpop.permute.xlu0 %1667  ;;  %v4828_v22 = vpop.permute.xlu1 %1687  ;;  %3070 = vmatmul.mubr.msk.f32.vlgmr.msra.gmra.mxu0 %vm714_vm8, %v4672_v58  ;;  %v1813_v58 = vsel %vm5302_vm2, %v4742_v26, %v4406_v47  ;;  %v1771_v47 = vsel %vm5305_vm12, %v4570_v63, %v4460_v59  ;;  %v1772_v14 = vsel %vm5307_vm11, %v4422_v51, %v4570_v63  ;;  %vm5309_vm1 = vmmov %vm5308_vm0 }
 0x362   : > { %2402 = vmatprep.subr.mxu1 %v1810_v62  ;;  %2330 = vmatpush1.msra.mxu0 %v1833_v8  ;;  %v1751_v59 = vsel %vm5309_vm1, %v4596_v0, %v4446_v56  ;;  %vm5310_vm2 = vmmov %vm5304_vm4  ;;  %vm5312_vm4 = vcmp.lt.s32.totalorder %v3535_v7, 101  ;;  %vm5319_vm1 = vcmp.lt.s32.totalorder %v3535_v7, 110 }
 0x363   : > { %2403 = vmatpush1.msra.mxu1 %v1811_v49  ;;  %2331 = vmatprep.subr.mxu0 %v1812_v43  ;;  %v1773_v54 = vsel %vm5310_vm2, %v4767_v4, %v4422_v51  ;;  %vm5311_vm3 = vmmov %vm5308_vm0  ;;  %v1730_v34 = vsel %vm5312_vm4, %v4480_v10, %v4620_v5  ;;  %v1692_v18 = vsel %vm5319_vm1, %v5330_v48, %v5326_v46 }
 0x364   : > { %2404 = vmatprep.subr.mxu1 %v1790_v55  ;;  %2332 = vmatpush1.msra.mxu0 %v1813_v58  ;;  %v1752_v63 = vsel %vm5311_vm3, %v4452_v57, %v4596_v0  ;;  %vm5313_vm12 = vmmov %vm5312_vm4 }
 0x365   : > { %2405 = vmatpush1.msra.mxu1 %v1791_v52  ;;  %v4864_v53 = vpop.permute.xlu0 %1665  ;;  %v1662_v21 = vpop.permute.xlu1 %1661  ;;  %2333 = vmatprep.subr.mxu0 %v1792_v29  ;;  %v1731_v51 = vsel %vm5313_vm12, %v4586_v16, %v4480_v10  ;;  %vm5314_vm10 = vmmov %vm5308_vm0  ;;  %vm5318_vm0 = vcmp.lt.s32.totalorder %v3535_v7, 109 }
 0x366   : > { %2406 = vmatprep.subr.mxu1 %v1770_v38  ;;  %2334 = vmatpush1.msra.mxu0 %v1793_v40  ;;  %v1753_v0 = vsel %vm5314_vm10, %v4721_v25, %v4452_v57  ;;  %vm5315_vm11 = vmmov %vm5312_vm4  ;;  %v1710_v36 = vsel %vm5318_vm0, %v5317_v39, %v5316_v35  ;;  %v5320_v57 = vld [vmem:[#allocation8_spill] sm:$0xff] }
 0x367   : > { %2407 = vmatpush1.msra.mxu1 %v1771_v47  ;;  %2335 = vmatprep.subr.mxu0 %v1772_v14  ;;  %v1732_v60 = vsel %vm5315_vm11, %v4438_v6, %v4586_v16  ;;  %vm5321_vm2 = vmmov %vm5318_vm0  ;;  %vm5328_vm11 = vcmp.lt.s32.totalorder %v3535_v7, 111 }
 0x368   : > { %2408 = vmatprep.subr.mxu1 %v1750_v13  ;;  %2336 = vmatpush1.msra.mxu0 %v1773_v54  ;;  %v1711_v28 = vsel %vm5321_vm2, %v5320_v57, %v5317_v39  ;;  %vm5322_vm3 = vmmov %vm5312_vm4 }
 0x369   : > { %2409 = vmatpush1.msra.mxu1 %v1751_v59  ;;  %v4898_v56 = vpop.permute.xlu0 %2691  ;;  %v4900_v37 = vpop.permute.xlu1 %1685  ;;  %2337 = vmatprep.subr.mxu0 %v1752_v63  ;;  %v1733_v16 = vsel %vm5322_vm3, %v4797_v24, %v4438_v6  ;;  %vm5324_vm4 = vmmov %vm5318_vm0 }
 0x36a   : > { %2410 = vmatprep.subr.mxu1 %v1730_v34  ;;  %2338 = vmatpush1.msra.mxu0 %v1753_v0  ;;  %v1690_v10 = vsel %vm5319_vm1, %v4791_v12, %v4900_v37  ;;  %v1713_v1 = vsel %vm5324_vm4, %v4739_v42, %v5323_v33  ;;  %vm5325_vm12 = vmmov %vm5318_vm0 }
 0x36b   : > { %2411 = vmatpush1.msra.mxu1 %v1731_v51  ;;  %2339 = vmatprep.subr.mxu0 %v1732_v60  ;;  %v1712_v44 = vsel %vm5325_vm12, %v5323_v33, %v5320_v57  ;;  %vm5327_vm10 = vmmov %vm5319_vm1  ;;  %vm5334_vm12 = vcmp.lt.s32.totalorder %v3535_v7, 89 }
 0x36c   : > { %2412 = vmatprep.subr.mxu1 %v1710_v36  ;;  %2340 = vmatpush1.msra.mxu0 %v1733_v16  ;;  %v1691_v6 = vsel %vm5327_vm10, %v5326_v46, %v4791_v12  ;;  %vm5329_vm0 = vmmov %vm5328_vm11  ;;  %v1829_v43 = vsel %vm5334_vm12, %v4562_v32, %v4681_v41  ;;  %vm5335_vm10 = vcmp.lt.s32.totalorder %v3535_v7, 90  ;;  %vm5342_vm12 = vcmp.lt.s32.totalorder %v3535_v7, 111 }
 0x36d   : > { %2413 = vmatpush1.msra.mxu1 %v1711_v28  ;;  %v2670_v3 = vpop.permute.xlu0 %2669  ;;  %v1664_v15 = vpop.permute.xlu1 %1663  ;;  %2341 = vmatprep.subr.mxu0 %v1712_v44  ;;  %vm5331_vm2 = vmmov %vm5319_vm1  ;;  %v1809_v55 = vsel %vm5335_vm10, %v4588_v17, %v4742_v26  ;;  %vm5338_vm1 = vcmp.lt.s32.totalorder %v3535_v7, 100  ;;  %v1669_v47 = vsel %vm5342_vm12, %v4864_v53, %v4826_v20  ;;  %vm5343_vm10 = vcmp.lt.s32.totalorder %v3535_v7, 37 }
 0x36e   : > { %2414 = vmatprep.subr.mxu1 %v1690_v10  ;;  %v1671_v61 = vsel %vm5328_vm11, %v1662_v21, %v1664_v15  ;;  %v1670_v27 = vsel %vm5329_vm0, %v1664_v15, %v4864_v53  ;;  %2342 = vmatpush1.msra.mxu0 %v1713_v1  ;;  %v1693_v12 = vsel %vm5331_vm2, %v4828_v22, %v5330_v48  ;;  %vm5332_vm3 = vmmov %vm5329_vm0  ;;  %vm5336_vm11 = vcmp.lt.s32.totalorder %v3535_v7, 91 }
 0x36f   : > { %2415 = vmatpush1.msra.mxu1 %v1691_v6  ;;  %2343 = vmatprep.subr.mxu0 %v1692_v18  ;;  %v1672_v31 = vsel %vm5332_vm3, %v4761_v30, %v1662_v21  ;;  %vm5333_vm4 = vmmov %vm5329_vm0  ;;  %v1789_v41 = vsel %vm5336_vm11, %v4578_v11, %v4706_v9  ;;  %vm5337_vm0 = vcmp.lt.s32.totalorder %v3535_v7, 99  ;;  %v1749_v9 = vsel %vm5338_vm1, %v4594_v19, %v4721_v25 }
 0x370   : > { %2416 = vmatprep.subr.mxu1 %v1670_v27  ;;  %2344 = vmatpush1.msra.mxu0 %v1693_v12  ;;  %v1673_v62 = vsel %vm5333_vm4, %v4826_v20, %v4761_v30  ;;  %v1769_v26 = vsel %vm5337_vm0, %v4604_v2, %v4767_v4  ;;  %vm5339_vm2 = vcmp.lt.s32.totalorder %v3535_v7, 101  ;;  %vm5340_vm3 = vcmp.lt.s32.totalorder %v3535_v7, 109  ;;  %vm5344_vm11 = vmmov %vm5343_vm10  ;;  %v5112_v12 = vld [vmem:[%s5218_s4 + $0x10] sm:$0xff] }
 0x371   : > { %2417 = vmatpush1.msra.mxu1 %v1671_v61  ;;  %v4958_v50 = vpop.permute.xlu0 %2667  ;;  %2345 = vmatprep.subr.mxu0 %v1672_v31  ;;  %v1729_v4 = vsel %vm5339_vm2, %v4620_v5, %v4797_v24  ;;  %v1709_v25 = vsel %vm5340_vm3, %v5316_v35, %v4739_v42  ;;  %vm5341_vm4 = vcmp.lt.s32.totalorder %v3535_v7, 110  ;;  %vm5345_vm0 = vcmp.lt.s32.totalorder %v3535_v7, 38 }
 0x372   : > { %2379 = vmatprep.mubr.f32.mxu0 %v5284_v45  ;;  %v2690_v49 = vpop.permute.xlu1 %2689  ;;  %2346 = vmatpush1.msra.mxu0 %v1673_v62  ;;  %v2680_v29 = vsel %vm1302_vm5, %v4958_v50, %v2670_v3  ;;  %v1689_v5 = vsel %vm5341_vm4, %v4900_v37, %v4828_v22  ;;  %vm5346_vm1 = vmmov %vm5345_vm0  ;;  %vm5347_vm2 = vcmp.lt.s32.totalorder %v3535_v7, 39 }
 0x373   : > { %v2699_v8 = vsel %vm1323_vm6, %v2690_v49, %v4898_v56  ;;  %2450 = vmatprep.mubr.f32.mxu1 %v5284_v45  ;;  %3225 = vmatprep.subr.mxu0 %v5284_v45  ;;  %vm5348_vm3 = vmmov %vm5347_vm2 }
 0x374   : > { %3072 = vmatmul.mubr.msk.f32.vlgmr.msra.gmra.mxu0 %vm714_vm8, %v1839_v23  ;;  %2771 = vmatprep.subr.mxu1 %v2699_v8  ;;  %vm5356_vm4 = vmmov %vm5347_vm2 }
 0x375   : > { %3226 = vmatpush3.msra.mxu0 %v1829_v43  ;;  %v4978_v30 = vpop.permute.xlu0 %2651  ;;  %3073 = vmatmul.mubr.msk.f32.vlgmr.msra.gmra.mxu1 %vm714_vm8, %v1839_v23  ;;  %vm5357_vm12 = vmmov %vm5347_vm2 }
 0x376   : > { %3227 = vmatprep.subr.mxu0 %v5284_v45  ;;  %v4985_v52 = vpop.permute.xlu1 %2687  ;;  %3243 = vmatprep.mubr.msk.f32.mxu0 %vm3339_vm9, %v5284_v45 }
 0x377   : > { %3228 = vmatpush3.msra.mxu0 %v1809_v55  ;;  %v2700_v32 = vsel %vm1323_vm6, %v4985_v52, %v2690_v49  ;;  %2821 = vmatprep.mubr.f32.mxu1 %v5284_v45 }
 0x378   : > { %3229 = vmatprep.subr.mxu0 %v5284_v45  ;;  %2772 = vmatpush1.msra.mxu1 %v2700_v32 }
 0x379   : > { %3230 = vmatpush3.msra.mxu0 %v1789_v41  ;;  %v2630_v17 = vpop.permute.xlu0 %2629 }
 0x37a   : > { %3231 = vmatprep.subr.mxu0 %v5284_v45  ;;  %v5004_v58 = vpop.permute.xlu1 %2671 }
 0x37b   : > { %3232 = vmatpush3.msra.mxu0 %v1769_v26  ;;  %v2679_v11 = vsel %vm1302_vm5, %v2670_v3, %v5004_v58 }
 0x37c   : > { %3233 = vmatprep.subr.mxu0 %v5284_v45  ;;  %2773 = vmatprep.subr.mxu1 %v2679_v11 }
 0x37d   : > { %3234 = vmatpush3.msra.mxu0 %v1749_v9  ;;  %2774 = vmatpush1.msra.mxu1 %v2680_v29  ;;  %v5017_v2 = vpop.permute.xlu0 %2627 }
 0x37e   : > { %3235 = vmatprep.subr.mxu0 %v5284_v45  ;;  %v2650_v38 = vpop.permute.xlu1 %2649  ;;  %v2640_v13 = vsel %vm1260_vm15, %v5017_v2, %v2630_v17 }
 0x37f   : > { %3236 = vmatpush3.msra.mxu0 %v1729_v4  ;;  %v2659_v19 = vsel %vm1281_vm7, %v2650_v38, %v4978_v30 }
 0x380   : > { %3237 = vmatprep.subr.mxu0 %v5284_v45  ;;  %2775 = vmatprep.subr.mxu1 %v2659_v19 }
 0x381   : > { %3238 = vmatpush3.msra.mxu0 %v1709_v25  ;;  %v5032_v21 = vpop.permute.xlu0 %2611 }
 0x382   : > { %3239 = vmatprep.subr.mxu0 %v5284_v45  ;;  %v5039_v24 = vpop.permute.xlu1 %2647 }
 0x383   : > { %3240 = vmatpush3.msra.mxu0 %v1689_v5  ;;  %v2660_v42 = vsel %vm1281_vm7, %v5039_v24, %v2650_v38 }
 0x384   : > { %3241 = vmatprep.subr.mxu0 %v5284_v45  ;;  %2776 = vmatpush1.msra.mxu1 %v2660_v42 }
 0x385   : > { %3242 = vmatpush3.msra.mxu0 %v1669_v47  ;;  %v2590_v40 = vpop.permute.xlu0 %2589 }
 0x386   : > { %v5049_v22 = vpop.permute.xlu1 %2631  ;;  %3244 = vmatmul.mubr.msk.f32.vlgmr.msra.gmra.mxu0 %vm714_vm8, %v1839_v23 }
 0x387   : > { %v2639_v14 = vsel %vm1260_vm15, %v2630_v17, %v5049_v22  ;;  %2892 = vmatprep.mubr.f32.mxu0 %v5284_v45 }
 0x388   : > { %2777 = vmatprep.subr.mxu1 %v2639_v14 }
 0x389   : > { %2778 = vmatpush1.msra.mxu1 %v2640_v13  ;;  %v5059_v20 = vpop.permute.xlu0 %2587 }
 0x38a   : > { %v2610_v53 = vpop.permute.xlu1 %2609  ;;  %v2600_v60 = vsel %vm1218_vm13, %v5059_v20, %v2590_v40 }
 0x38b   : > { %v2619_v59 = vsel %vm1239_vm14, %v2610_v53, %v5032_v21 }
 0x38c   : > { %2779 = vmatprep.subr.mxu1 %v2619_v59 }
 0x38d   : > { %v5064_v54 = vpop.permute.xlu0 %2571 }
 0x38e   : > { %v5066_v63 = vpop.permute.xlu1 %2607 }
 0x38f   : > { %v2620_v34 = vsel %vm1239_vm14, %v5066_v63, %v2610_v53 }
 0x390   : > { %2780 = vmatpush1.msra.mxu1 %v2620_v34 }
 0x391   : > { %v2550_v37 = vpop.permute.xlu0 %2549 }
 0x392   : > { %v5071_v51 = vpop.permute.xlu1 %2591 }
 0x393   : > { %v2599_v0 = vsel %vm1218_vm13, %v2590_v40, %v5071_v51 }
 0x394   : > { %2781 = vmatprep.subr.mxu1 %v2599_v0 }
 0x395   : > { %2782 = vmatpush1.msra.mxu1 %v2600_v60  ;;  %v5079_v35 = vpop.permute.xlu0 %2547 }
 0x396   : > { %v2570_v39 = vpop.permute.xlu1 %2569  ;;  %v2560_v44 = vsel %vm5346_vm1, %v5079_v35, %v2550_v37 }
 0x397   : > { %v2579_v36 = vsel %vm5343_vm10, %v2570_v39, %v5064_v54 }
 0x398   : > { %2783 = vmatprep.subr.mxu1 %v2579_v36 }
 0x399   : > { %v5084_v10 = vpop.permute.xlu0 %2531 }
 0x39a   : > { %v5086_v57 = vpop.permute.xlu1 %2567 }
 0x39b   : > { %v2580_v28 = vsel %vm5344_vm11, %v5086_v57, %v2570_v39 }
 0x39c   : > { %2784 = vmatpush1.msra.mxu1 %v2580_v28 }
 0x39d   : > { %v2696_v16 = vpop.permute.xlu0 %2695 }
 0x39e   : > { %v5091_v33 = vpop.permute.xlu1 %2551 }
 0x39f   : > { %v2559_v1 = vsel %vm5345_vm0, %v2550_v37, %v5091_v33 }
 0x3a0   : > { %2785 = vmatprep.subr.mxu1 %v2559_v1 }
 0x3a1   : > { %2786 = vmatpush1.msra.mxu1 %v2560_v44  ;;  %v2674_v3 = vpop.permute.xlu0 %2673 }
 0x3a2   : > { %v2530_v15 = vpop.permute.xlu1 %2529  ;;  %v2678_v43 = vsel %vm1302_vm5, %v5004_v58, %v2674_v3 }
 0x3a3   : > { %v2539_v46 = vsel %vm5347_vm2, %v2530_v15, %v5084_v10 }
 0x3a4   : > { %2787 = vmatprep.subr.mxu1 %v2539_v46 }
 0x3a5   : > { %v2654_v6 = vpop.permute.xlu0 %2653 }
 0x3a6   : > { %v2694_v61 = vpop.permute.xlu1 %2693  ;;  %v2658_v41 = vsel %vm1281_vm7, %v4978_v30, %v2654_v6 }
 0x3a7   : > { %v2698_v27 = vsel %vm1323_vm6, %v4898_v56, %v2694_v61  ;;  %v2697_v48 = vsel %vm1323_vm6, %v2694_v61, %v2696_v16  ;;  %v2701_v56 = vsel %vm1323_vm6, %v2696_v16, %v4985_v52 }
 0x3a8   : > { %2842 = vmatprep.subr.mxu0 %v2697_v48  ;;  %v3306_v48 = vld [vmem:[%s3399_s26] sm:$0xff] }
 0x3a9   : > { %2843 = vmatpush1.msra.mxu0 %v2698_v27  ;;  %v2634_v31 = vpop.permute.xlu0 %2633 }
 0x3aa   : > { %v5107_v18 = vpop.permute.xlu1 %2527  ;;  %v2638_v9 = vsel %vm1260_vm15, %v5049_v22, %v2634_v31 }
 0x3ab   : > { %v2540_v23 = vsel %vm5348_vm3, %v5107_v18, %v2530_v15 }
 0x3ac   : > { %2788 = vmatpush1.msra.mxu1 %v2540_v23 }
 0x3ad   : > { %3076 = vmatmul.mubr.msk.f32.vlgmr.msra.gmra.mxu1 %vm714_vm8, %v5112_v12  ;;  %3246 = vmatprep.subr.mxu1 %v5284_v45  ;;  %v2614_v55 = vpop.permute.xlu0 %2613 }
 0x3ae   : > { %3247 = vmatpush3.msra.mxu1 %v2701_v56  ;;  %v2676_v62 = vpop.permute.xlu1 %2675  ;;  %3264 = vmatprep.mubr.msk.f32.mxu1 %vm3339_vm9, %v5284_v45  ;;  %v2618_v4 = vsel %vm1239_vm14, %v5032_v21, %v2614_v55  ;;  %vm5352_vm9 = vmmov %vm5345_vm0 }
 0x3af   : > { %v2681_v49 = vsel %vm1302_vm5, %v2676_v62, %v4958_v50  ;;  %3248 = vmatprep.subr.mxu1 %v5284_v45  ;;  %v2677_v8 = vsel %vm1302_vm5, %v2674_v3, %v2676_v62  ;;  %vm5349_vm5 = vmmov %vm5343_vm10 }
 0x3b0   : > { %2844 = vmatprep.subr.mxu0 %v2677_v8  ;;  %3249 = vmatpush3.msra.mxu1 %v2681_v49  ;;  %vm5350_vm6 = vmmov %vm5349_vm5 }
 0x3b1   : > { %2845 = vmatpush1.msra.mxu0 %v2678_v43  ;;  %3250 = vmatprep.subr.mxu1 %v5284_v45  ;;  %v2594_v26 = vpop.permute.xlu0 %2593 }
 0x3b2   : > { %v2656_v52 = vpop.permute.xlu1 %2655 }
 0x3b3   : > { %v2661_v50 = vsel %vm1281_vm7, %v2656_v52, %v5039_v24  ;;  %v2657_v32 = vsel %vm1281_vm7, %v2654_v6, %v2656_v52  ;;  %v2598_v24 = vsel %vm1218_vm13, %v5071_v51, %v2594_v26  ;;  %vm5351_vm7 = vmmov %vm5349_vm5 }
 0x3b4   : > { %2846 = vmatprep.subr.mxu0 %v2657_v32  ;;  %3251 = vmatpush3.msra.mxu1 %v2661_v50 }
 0x3b5   : > { %2847 = vmatpush1.msra.mxu0 %v2658_v41  ;;  %3252 = vmatprep.subr.mxu1 %v5284_v45  ;;  %v2574_v38 = vpop.permute.xlu0 %2573 }
 0x3b6   : > { %v2636_v17 = vpop.permute.xlu1 %2635  ;;  %v2578_v22 = vsel %vm5351_vm7, %v5064_v54, %v2574_v38 }
 0x3b7   : > { %v2641_v58 = vsel %vm1260_vm15, %v2636_v17, %v5017_v2  ;;  %v2637_v11 = vsel %vm1260_vm15, %v2634_v31, %v2636_v17  ;;  %vm5355_vm15 = vmmov %vm5347_vm2  ;;  %v3307_v31 = vld [vmem:[%s3399_s26 + $0x8] sm:$0xff] }
 0x3b8   : > { %2848 = vmatprep.subr.mxu0 %v2637_v11  ;;  %3253 = vmatpush3.msra.mxu1 %v2641_v58  ;;  %v3309_v11 = vld [vmem:[%s3399_s26 + $0x10] sm:$0xff] }
 0x3b9   : > { %2849 = vmatpush1.msra.mxu0 %v2638_v9  ;;  %3254 = vmatprep.subr.mxu1 %v5284_v45  ;;  %v2554_v42 = vpop.permute.xlu0 %2553 }
 0x3ba   : > { %v2616_v30 = vpop.permute.xlu1 %2615 }
 0x3bb   : > { %v2621_v29 = vsel %vm1239_vm14, %v2616_v30, %v5066_v63  ;;  %v2617_v2 = vsel %vm1239_vm14, %v2614_v55, %v2616_v30  ;;  %vm5354_vm14 = vmmov %vm5345_vm0 }
 0x3bc   : > { %2850 = vmatprep.subr.mxu0 %v2617_v2  ;;  %3255 = vmatpush3.msra.mxu1 %v2621_v29  ;;  %v2558_v53 = vsel %vm5354_vm14, %v5091_v33, %v2554_v42  ;;  %v3310_v29 = vld [vmem:[%s3399_s26 + $0x18] sm:$0xff] }
 0x3bd   : > { %2851 = vmatpush1.msra.mxu0 %v2618_v4  ;;  %3256 = vmatprep.subr.mxu1 %v5284_v45  ;;  %v2534_v59 = vpop.permute.xlu0 %2533 }
 0x3be   : > { %v2596_v19 = vpop.permute.xlu1 %2595  ;;  %v2538_v37 = vsel %vm5357_vm12, %v5084_v10, %v2534_v59 }
 0x3bf   : > { %v2601_v25 = vsel %vm1218_vm13, %v2596_v19, %v5059_v20  ;;  %v2597_v5 = vsel %vm1218_vm13, %v2594_v26, %v2596_v19  ;;  %vm5353_vm13 = vmmov %vm5345_vm0  ;;  %v3308_v26 = vld [vmem:[%s3399_s26 + $0x20] sm:$0xff] }
 0x3c0   : > { %2852 = vmatprep.subr.mxu0 %v2597_v5  ;;  %3257 = vmatpush3.msra.mxu1 %v2601_v25 }
 0x3c1   : > { %2853 = vmatpush1.msra.mxu0 %v2598_v24  ;;  %3258 = vmatprep.subr.mxu1 %v5284_v45 }
 0x3c2   : > { %v2576_v21 = vpop.permute.xlu1 %2575 }
 0x3c3   : > { %v2581_v47 = vsel %vm5349_vm5, %v2576_v21, %v5086_v57  ;;  %v2577_v40 = vsel %vm5350_vm6, %v2574_v38, %v2576_v21 }
 0x3c4   : > { %2854 = vmatprep.subr.mxu0 %v2577_v40  ;;  %3259 = vmatpush3.msra.mxu1 %v2581_v47 }
 0x3c5   : > { %2855 = vmatpush1.msra.mxu0 %v2578_v22  ;;  %3260 = vmatprep.subr.mxu1 %v5284_v45 }
 0x3c6   : > { %v2556_v14 = vpop.permute.xlu1 %2555 }
 0x3c7   : > { %v2561_v13 = vsel %vm5352_vm9, %v2556_v14, %v5079_v35  ;;  %v2557_v20 = vsel %vm5353_vm13, %v2554_v42, %v2556_v14 }
 0x3c8   : > { %2856 = vmatprep.subr.mxu0 %v2557_v20  ;;  %3261 = vmatpush3.msra.mxu1 %v2561_v13 }
 0x3c9   : > { %2857 = vmatpush1.msra.mxu0 %v2558_v53  ;;  %3262 = vmatprep.subr.mxu1 %v5284_v45 }
 0x3ca   : > { %v2536_v54 = vpop.permute.xlu1 %2535  ;;  %v2978_v46 = vpop.permute.xlu0 %2977 }
 0x3cb   : > { %v2541_v63 = vsel %vm5355_vm15, %v2536_v54, %v5107_v18  ;;  %v2537_v34 = vsel %vm5356_vm4, %v2534_v59, %v2536_v54 }
 0x3cc   : > { %2858 = vmatprep.subr.mxu0 %v2537_v34  ;;  %3263 = vmatpush3.msra.mxu1 %v2541_v63 }
 0x3cd   : > { %2859 = vmatpush1.msra.mxu0 %v2538_v37  ;;  %3265 = vmatmul.mubr.msk.f32.vlgmr.msra.gmra.mxu1 %vm714_vm8, %v5112_v12 }
 0x3ce   : > { %3077 = vmatmul.mubr.msk.f32.vlgmr.msra.gmra.mxu0 %vm714_vm8, %v5112_v12 }
 0x40a   : > { %v2166_v45 = vpop.f32.mrf.mxu1 }
 0x40c   : > { %v2168_v51 = vpop.f32.mrf.mxu1 }
 0x420   : > { %v2308_v0 = vpop.f32.mrf.mxu1 }
 0x421   : > { %v2237_v35 = vpop.f32.mrf.mxu0 }
 0x422   : > { %v3224_v60 = vpop.f32.mrf.mxu1 }
 0x423   : > { %v2239_v39 = vpop.f32.mrf.mxu0 }
 0x434   : > { %v2381_v36 = vpop.f32.mrf.mxu0 }
 0x435   : > { %v2452_v16 = vpop.f32.mrf.mxu1  ;;  %v2382_v1 = vadd.f32 %v2381_v36, %v2166_v45 }
 0x436   : > { %v2383_v7 = vpop.f32.mrf.mxu0  ;;  %v2453_v56 = vadd.f32 %v2452_v16, %v2237_v35 }
 0x437   : > { %v2454_v33 = vpop.f32.mrf.mxu1  ;;  %v2384_v3 = vadd.f32 %v2383_v7, %v2168_v51 }
 0x438   : > { %v2455_v43 = vadd.f32 %v2454_v33, %v2239_v39 }
 0x446   : > { %v2523_v10 = vpop.f32.mrf.mxu0 }
 0x447   : > { %v2524_v57 = vadd.f32 %v2523_v10, %v2308_v0 }
 0x448   : > { %v3245_v28 = vpop.f32.mrf.mxu0 }
 0x46d   : > { %v2823_v44 = vpop.f32.mrf.mxu1 }
 0x46e   : > { %v2969_v15 = vadd.f32 %v2823_v44, %v2382_v1 }
 0x46f   : > { %v2825_v6 = vpop.f32.mrf.mxu1 }
 0x470   : > { %v2980_v61 = vadd.f32 %v2978_v46, %v2969_v15  ;;  %v2970_v27 = vadd.f32 %v2825_v6, %v2384_v3 }
 0x472   : > { %v2985_v18 = vadd.f32 %v3306_v48, %v2980_v61  ;;  %v2981_v12 = vadd.f32 %v2978_v46, %v2970_v27 }
 0x474   : > { %2990 = vst [vmem:[%s251_s24] sm:$0xff] %v2985_v18  ;;  %v2986_v23 = vadd.f32 %v3307_v31, %v2981_v12 }
 0x476   : > { %2991 = vst [vmem:[%s251_s24 + $0x8] sm:$0xff] %v2986_v23 }
 0x48d   : > { %v2965_v62 = vpop.f32.mrf.mxu1 }
 0x48e   : > { %v2973_v49 = vadd.f32 %v2965_v62, %v2524_v57  ;;  %v2894_v8 = vpop.f32.mrf.mxu0 }
 0x48f   : > { %v2971_v55 = vadd.f32 %v2894_v8, %v2453_v56  ;;  %v3266_v52 = vpop.f32.mrf.mxu1 }
 0x490   : > { %v2984_v50 = vadd.f32 %v2978_v46, %v2973_v49  ;;  %v2896_v32 = vpop.f32.mrf.mxu0 }
 0x491   : > { %v2982_v41 = vadd.f32 %v2978_v46, %v2971_v55  ;;  %v2972_v17 = vadd.f32 %v2896_v32, %v2455_v43 }
 0x492   : > { %v2989_v58 = vadd.f32 %v3308_v26, %v2984_v50 }
 0x493   : > { %v2987_v9 = vadd.f32 %v3309_v11, %v2982_v41  ;;  %v2983_v30 = vadd.f32 %v2978_v46, %v2972_v17 }
 0x494   : > { %2994 = vst [vmem:[%s251_s24 + $0x20] sm:$0xff] %v2989_v58 }
 0x495   : > { %2992 = vst [vmem:[%s251_s24 + $0x10] sm:$0xff] %v2987_v9  ;;  %v2988_v2 = vadd.f32 %v3310_v29, %v2983_v30 }
 0x497   : > { %2993 = vst [vmem:[%s251_s24 + $0x18] sm:$0xff] %v2988_v2 }
 0x498 PF: > { %s16_s21 = sadd.s32 1, %s3317_s21  }
 0x499   : > { %p13_p4 = scmp.ge.s32.totalorder %s16_s21, 4  }
 0x49b   :  { %15 = sbr.rel (!%p13_p4) target bundleno = 1 (0x1), region = 78 }

</bundles_post_ra>
